<compile_context>
chip_gen: v7x
topology: tpu7x:2x2x1
jax: 0.10.0
libtpu: 0.0.40
codegen_flags: <defaults>
</compile_context>

<pallas_src>
import functools
import math

import jax
import jax.numpy as jnp
from jax import lax
from jax.experimental import pallas as pl
from jax.experimental.pallas import tpu as pltpu


_SQRT2_INV = 1.0 / math.sqrt(2.0)
_NEG_INF = -1e30  # large finite negative (safe for f32 softmax; diagonal always allowed)


def _round_up(x, m):
    return ((x + m - 1) // m) * m


def _pick_tile(dim, cap, mult):
    """Largest tile <= cap that is a multiple of `mult` and evenly divides `dim`.
    If dim <= cap the full dim is used (single tile -> weights never re-streamed)."""
    if dim <= cap:
        return dim
    t = (cap // mult) * mult
    while t >= mult:
        if dim % t == 0:
            return t
        t -= mult
    return dim


_ROW_CAP = 512     # row (token) tile cap
_COL_CAP = 1024    # weight column / hidden tile cap


# ----------------------------- Pallas kernels -------------------------------

def _ln_kernel(x_ref, g_ref, b_ref, o_ref):
    # x: [tm, D], g/b: [1, D]
    x = x_ref[...].astype(jnp.float32)
    mean = jnp.mean(x, axis=-1, keepdims=True)
    var = jnp.mean(jnp.square(x - mean), axis=-1, keepdims=True)
    y = (x - mean) * lax.rsqrt(var + 1e-5)
    o_ref[...] = (y * g_ref[...] + b_ref[...]).astype(o_ref.dtype)


def _ln_linear_kernel(x_ref, g_ref, bln_ref, w_ref, b_ref, o_ref, xn_ref):
    # Fused LayerNorm (f32, computed once per row tile) + matmul against a column tile of w.
    # Grid: (rows, out-cols); column axis is the inner "arbitrary" axis so xn_ref carries.
    # x: [tm, D] bf16, g/bln: [1, D] f32, w: [D, tn] bf16, b: [1, tn] f32, xn: [tm, D] bf16
    j = pl.program_id(1)

    @pl.when(j == 0)
    def _():
        x = x_ref[...].astype(jnp.float32)
        mean = jnp.mean(x, axis=-1, keepdims=True)
        var = jnp.mean(jnp.square(x - mean), axis=-1, keepdims=True)
        xn = (x - mean) * lax.rsqrt(var + 1e-5) * g_ref[...] + bln_ref[...]
        xn_ref[...] = xn.astype(xn_ref.dtype)

    acc = jnp.dot(xn_ref[...], w_ref[...], preferred_element_type=jnp.float32)
    o_ref[...] = (acc + b_ref[...]).astype(o_ref.dtype)


def _attn_kernel(qkv_ref, wo_ref, bo_ref, xres_ref, o_ref, *, heads, dh, s_len):
    # Per-batch fused causal MHA + output projection + residual add.
    # qkv: [1, S, 3D] bf16; wo: [D, D] bf16; bo: [1, D] f32; xres: [1, S, D] bf16
    D = heads * dh
    scale = 1.0 / math.sqrt(dh)
    qkv = qkv_ref[0]                                     # [S, 3D] bf16

    # causal mask generated in-kernel (also masks zero-padded key columns for valid rows)
    row = lax.broadcasted_iota(jnp.int32, (s_len, s_len), 0)
    col = lax.broadcasted_iota(jnp.int32, (s_len, s_len), 1)
    allowed = col <= row

    # single [S, D] f32 accumulator: output projection folded into the head loop (no concat)
    acc = jnp.zeros((s_len, D), jnp.float32)
    for h in range(heads):                               # static unroll (heads is a Python int)
        q = qkv[:, h * dh:(h + 1) * dh]
        k = qkv[:, D + h * dh:D + (h + 1) * dh]
        v = qkv[:, 2 * D + h * dh:2 * D + (h + 1) * dh]
        s = lax.dot_general(q, k, (((1,), (1,)), ((), ())),
                            preferred_element_type=jnp.float32) * scale
        s = jnp.where(allowed, s, _NEG_INF)
        m = jnp.max(s, axis=-1, keepdims=True)
        p = jnp.exp(s - m)
        denom = jnp.sum(p, axis=-1, keepdims=True)
        p = p * pl.reciprocal(denom, approx=True)        # EUP slot, ~free
        attn_h = jnp.dot(p.astype(v.dtype), v,
                         preferred_element_type=jnp.float32)          # [S, dh] f32
        acc = acc + jnp.dot(attn_h.astype(wo_ref.dtype),
                            wo_ref[h * dh:(h + 1) * dh, :],
                            preferred_element_type=jnp.float32)       # [S, D] f32

    o_ref[0] = (acc + bo_ref[...] + xres_ref[0].astype(jnp.float32)).astype(o_ref.dtype)


def _ln_mlp_kernel(x_ref, g_ref, bln_ref, wfc_ref, bfc_ref, wproj_ref, bproj_ref,
                   o_ref, xn_ref, acc_ref):
    # Fused LN2 + fc + exact GELU + proj + residual. Grid axis 1 tiles the hidden (4D) dim;
    # acc_ref accumulates the proj result in f32 (hidden never round-trips HBM).
    kk = pl.program_id(1)

    @pl.when(kk == 0)
    def _():
        x = x_ref[...].astype(jnp.float32)
        mean = jnp.mean(x, axis=-1, keepdims=True)
        var = jnp.mean(jnp.square(x - mean), axis=-1, keepdims=True)
        xn = (x - mean) * lax.rsqrt(var + 1e-5) * g_ref[...] + bln_ref[...]
        xn_ref[...] = xn.astype(xn_ref.dtype)
        acc_ref[...] = jnp.zeros_like(acc_ref)

    h = jnp.dot(xn_ref[...], wfc_ref[...], preferred_element_type=jnp.float32)
    h = h + bfc_ref[...]
    h = 0.5 * h * (1.0 + lax.erf(h * _SQRT2_INV))        # exact GELU (torch.nn.GELU)
    acc_ref[...] += jnp.dot(h.astype(wproj_ref.dtype), wproj_ref[...],
                            preferred_element_type=jnp.float32)

    @pl.when(kk == pl.num_programs(1) - 1)
    def _():
        out = x_ref[...].astype(jnp.float32) + acc_ref[...] + bproj_ref[...]
        o_ref[...] = out.astype(o_ref.dtype)


# ----------------------------- kernel wrappers -------------------------------

def pallas_layernorm(x2d, gamma, beta):
    M, D = x2d.shape
    tm = _pick_tile(M, _ROW_CAP, 8)
    return pl.pallas_call(
        _ln_kernel,
        out_shape=jax.ShapeDtypeStruct((M, D), jnp.float32),
        grid=(M // tm,),
        in_specs=[
            pl.BlockSpec((tm, D), lambda i: (i, 0)),
            pl.BlockSpec((1, D), lambda i: (0, 0)),
            pl.BlockSpec((1, D), lambda i: (0, 0)),
        ],
        out_specs=pl.BlockSpec((tm, D), lambda i: (i, 0)),
        compiler_params=pltpu.CompilerParams(dimension_semantics=("parallel",)),
    )(x2d, gamma.reshape(1, D), beta.reshape(1, D))


def pallas_ln_linear(x2d, gamma, beta, w, b, out_dtype=jnp.bfloat16):
    M, D = x2d.shape
    N = w.shape[1]
    tm = _pick_tile(M, _ROW_CAP, 8)
    tn = _pick_tile(N, _COL_CAP, 128)
    return pl.pallas_call(
        _ln_linear_kernel,
        out_shape=jax.ShapeDtypeStruct((M, N), out_dtype),
        grid=(M // tm, N // tn),
        in_specs=[
            pl.BlockSpec((tm, D), lambda i, j: (i, 0)),
            pl.BlockSpec((1, D), lambda i, j: (0, 0)),
            pl.BlockSpec((1, D), lambda i, j: (0, 0)),
            pl.BlockSpec((D, tn), lambda i, j: (0, j)),
            pl.BlockSpec((1, tn), lambda i, j: (0, j)),
        ],
        out_specs=pl.BlockSpec((tm, tn), lambda i, j: (i, j)),
        scratch_shapes=[pltpu.VMEM((tm, D), jnp.bfloat16)],
        compiler_params=pltpu.CompilerParams(
            dimension_semantics=("parallel", "arbitrary")),
    )(x2d, gamma.reshape(1, D), beta.reshape(1, D), w, b.reshape(1, N))


def pallas_attention_block(qkv, w_out, b_out, x_res, *, heads):
    B, S, threeD = qkv.shape
    D = threeD // 3
    dh = D // heads
    kern = functools.partial(_attn_kernel, heads=heads, dh=dh, s_len=S)
    return pl.pallas_call(
        kern,
        out_shape=jax.ShapeDtypeStruct((B, S, D), jnp.bfloat16),
        grid=(B,),
        in_specs=[
            pl.BlockSpec((1, S, threeD), lambda b: (b, 0, 0)),
            pl.BlockSpec((D, D), lambda b: (0, 0)),
            pl.BlockSpec((1, D), lambda b: (0, 0)),
            pl.BlockSpec((1, S, D), lambda b: (b, 0, 0)),
        ],
        out_specs=pl.BlockSpec((1, S, D), lambda b: (b, 0, 0)),
        compiler_params=pltpu.CompilerParams(dimension_semantics=("parallel",)),
    )(qkv, w_out, b_out.reshape(1, D), x_res)


def pallas_ln_mlp(x2d, gamma, beta, w_fc, b_fc, w_proj, b_proj):
    M, D = x2d.shape
    F = w_fc.shape[1]
    tm = _pick_tile(M, _ROW_CAP, 8)
    tf = _pick_tile(F, _COL_CAP, 128)
    return pl.pallas_call(
        _ln_mlp_kernel,
        out_shape=jax.ShapeDtypeStruct((M, D), jnp.bfloat16),
        grid=(M // tm, F // tf),
        in_specs=[
            pl.BlockSpec((tm, D), lambda i, k: (i, 0)),
            pl.BlockSpec((1, D), lambda i, k: (0, 0)),
            pl.BlockSpec((1, D), lambda i, k: (0, 0)),
            pl.BlockSpec((D, tf), lambda i, k: (0, k)),
            pl.BlockSpec((1, tf), lambda i, k: (0, k)),
            pl.BlockSpec((tf, D), lambda i, k: (k, 0)),
            pl.BlockSpec((1, D), lambda i, k: (0, 0)),
        ],
        out_specs=pl.BlockSpec((tm, D), lambda i, k: (i, 0)),
        scratch_shapes=[pltpu.VMEM((tm, D), jnp.bfloat16),
                        pltpu.VMEM((tm, D), jnp.float32)],
        compiler_params=pltpu.CompilerParams(
            dimension_semantics=("parallel", "arbitrary")),
    )(x2d, gamma.reshape(1, D), beta.reshape(1, D),
      w_fc, b_fc.reshape(1, F), w_proj, b_proj.reshape(1, D))


# ----------------------------- model (glue) ----------------------------------

def residual_attention_block(p, x, heads):
    """OpenCLIP ResidualAttentionBlock: x += attn(ln_1(x)); x += mlp(ln_2(x))."""
    B, S, D = x.shape
    M = B * S
    x2 = x.reshape(M, D)

    # fused LN1 + QKV projection -> bf16 slab [B, S, 3D]
    qkv = pallas_ln_linear(x2, p["ln1_g"], p["ln1_b"], p["w_qkv"], p["b_qkv"],
                           out_dtype=jnp.bfloat16).reshape(B, S, 3 * D)

    # fused causal MHA + out-proj + residual add (bf16 residual stream out)
    x = pallas_attention_block(qkv, p["w_out"], p["b_out"], x, heads=heads)

    # fused LN2 + MLP (fc + exact GELU + proj) + residual add
    x = pallas_ln_mlp(x.reshape(M, D), p["ln2_g"], p["ln2_b"],
                      p["w_fc"], p["b_fc"], p["w_proj"], p["b_proj"]).reshape(B, S, D)
    return x


def encode_with_transformer(params, tokens, *, heads):
    """Equivalent of FrozenOpenCLIPEmbedder2.encode_with_transformer (legacy, layer='last')."""
    B, S = tokens.shape
    # token embedding gather + positional embedding (JAX glue)
    x = params["token_embedding"][tokens] + params["positional_embedding"][None, :S]  # [B,S,D]
    D = x.shape[-1]

    # pad the sequence only to a sublane multiple (8); padded key columns are excluded by the
    # in-kernel causal mask, padded query rows are sliced off below.
    s_pad = _round_up(S, 8)
    if s_pad != S:
        x = jnp.pad(x, ((0, 0), (0, s_pad - S), (0, 0)))

    # residual stream carried bf16 between kernels; LN/softmax/accumulation are f32 in-kernel.
    x = x.astype(jnp.bfloat16)

    for blk in params["blocks"]:
        x = residual_attention_block(blk, x, heads)

    # legacy path: z = ln_final(x['last'])
    out = pallas_layernorm(x.reshape(B * s_pad, D),
                           params["ln_final_g"], params["ln_final_b"])
    return out.reshape(B, s_pad, D)[:, :S]


# ----------------------------- parameter init --------------------------------

def init_params(key, *, vocab, seq, width, layers):
    mlp_width = 4 * width
    keys = jax.random.split(key, 3 + layers)
    params = {
        "token_embedding": 0.02 * jax.random.normal(keys[0], (vocab, width), jnp.float32),
        "positional_embedding": 0.01 * jax.random.normal(keys[1], (seq, width), jnp.float32),
        "ln_final_g": jnp.ones((width,), jnp.float32),
        "ln_final_b": jnp.zeros((width,), jnp.float32),
        "blocks": [],
    }
    for li in range(layers):
        ks = jax.random.split(keys[3 + li], 4)
        blk = {
            "ln1_g": jnp.ones((width,), jnp.float32),
            "ln1_b": jnp.zeros((width,), jnp.float32),
            "ln2_g": jnp.ones((width,), jnp.float32),
            "ln2_b": jnp.zeros((width,), jnp.float32),
            # matmul weights stored bf16 (MXU native); biases / LN params stay f32.
            # in_proj (Q|K|V) stored as [D, 3D] so that y = x @ w + b
            "w_qkv": (0.02 * jax.random.normal(ks[0], (width, 3 * width), jnp.float32)
                      ).astype(jnp.bfloat16),
            "b_qkv": jnp.zeros((3 * width,), jnp.float32),
            "w_out": (0.02 * jax.random.normal(ks[1], (width, width), jnp.float32)
                      ).astype(jnp.bfloat16),
            "b_out": jnp.zeros((width,), jnp.float32),
            "w_fc": (0.02 * jax.random.normal(ks[2], (width, mlp_width), jnp.float32)
                     ).astype(jnp.bfloat16),
            "b_fc": jnp.zeros((mlp_width,), jnp.float32),
            "w_proj": (0.02 * jax.random.normal(ks[3], (mlp_width, width), jnp.float32)
                       ).astype(jnp.bfloat16),
            "b_proj": jnp.zeros((width,), jnp.float32),
        }
        params["blocks"].append(blk)
    return params


# ----------------------------- main -------------------------------------------

if __name__ == "__main__":
    # small synthetic config (real ViT-H-14 text tower: vocab=49408, seq=77, width=1024,
    # heads=16, layers=24 — shapes scaled down here)
    B, S, D, H, L, V = 2, 8, 32, 4, 2, 100

    key = jax.random.PRNGKey(0)
    pkey, tkey = jax.random.split(key)
    params = init_params(pkey, vocab=V, seq=S, width=D, layers=L)
    tokens = jax.random.randint(tkey, (B, S), 0, V, dtype=jnp.int32)

    # heads is a static Python int (NOT part of the traced params pytree)
    fwd = jax.jit(functools.partial(encode_with_transformer, heads=H))
    z = fwd(params, tokens)
    z = jax.block_until_ready(z)

    assert z.shape == (B, S, D) and z.dtype == jnp.float32
    assert bool(jnp.all(jnp.isfinite(z)))
    print("KERNEL_OK")
</pallas_src>

<mosaic_0001>
module attributes {stable_mosaic.version = 11 : i64} {
  func.func @_ln_kernel(%arg0: i32, %arg1: memref<16x32xbf16, #tpu.memory_space<vmem>>, %arg2: memref<1x32xf32, #tpu.memory_space<vmem>>, %arg3: memref<1x32xf32, #tpu.memory_space<vmem>>, %arg4: memref<16x32xf32, #tpu.memory_space<vmem>>) attributes {dimension_semantics = [#tpu.dimension_semantics<parallel>], iteration_bounds = array<i64: 1>, scalar_prefetch = 0 : i64, scratch_operands = 0 : i64, tpu.core_type = #tpu.core_type<tc>, window_params = [{transform_indices = @transform_0, window_bounds = array<i64: 16, 32>}, {pipeline_mode = #tpu.pipeline_mode<synchronous>, transform_indices = @transform_1, window_bounds = array<i64: 1, 32>}, {pipeline_mode = #tpu.pipeline_mode<synchronous>, transform_indices = @transform_2, window_bounds = array<i64: 1, 32>}, {transform_indices = @transform_3, window_bounds = array<i64: 16, 32>}]} {
    %c0 = arith.constant 0 : index
    %c0_0 = arith.constant 0 : index
    %0 = vector.load %arg1[%c0, %c0_0] : memref<16x32xbf16, #tpu.memory_space<vmem>>, vector<16x32xbf16>
    %1 = arith.extf %0 : vector<16x32xbf16> to vector<16x32xf32>
    %cst = arith.constant dense<0.000000e+00> : vector<16xf32>
    %2 = vector.multi_reduction <add>, %1, %cst [1] : vector<16x32xf32> to vector<16xf32>
    %3 = vector.shape_cast %2 : vector<16xf32> to vector<16x1xf32>
    %cst_1 = arith.constant 3.200000e+01 : f32
    %4 = vector.broadcast %cst_1 : f32 to vector<16x1xf32>
    %5 = arith.divf %3, %4 : vector<16x1xf32>
    %6 = vector.broadcast %5 : vector<16x1xf32> to vector<16x32xf32>
    %7 = arith.subf %1, %6 : vector<16x32xf32>
    %8 = arith.mulf %7, %7 : vector<16x32xf32>
    %cst_2 = arith.constant dense<0.000000e+00> : vector<16xf32>
    %9 = vector.multi_reduction <add>, %8, %cst_2 [1] : vector<16x32xf32> to vector<16xf32>
    %10 = vector.shape_cast %9 : vector<16xf32> to vector<16x1xf32>
    %cst_3 = arith.constant 3.200000e+01 : f32
    %11 = vector.broadcast %cst_3 : f32 to vector<16x1xf32>
    %12 = arith.divf %10, %11 : vector<16x1xf32>
    %13 = vector.broadcast %5 : vector<16x1xf32> to vector<16x32xf32>
    %14 = arith.subf %1, %13 : vector<16x32xf32>
    %cst_4 = arith.constant 9.99999974E-6 : f32
    %15 = vector.broadcast %cst_4 : f32 to vector<16x1xf32>
    %16 = arith.addf %12, %15 : vector<16x1xf32>
    %17 = math.rsqrt %16 : vector<16x1xf32>
    %18 = vector.broadcast %17 : vector<16x1xf32> to vector<16x32xf32>
    %19 = arith.mulf %14, %18 : vector<16x32xf32>
    %c0_5 = arith.constant 0 : index
    %c0_6 = arith.constant 0 : index
    %20 = vector.load %arg2[%c0_5, %c0_6] : memref<1x32xf32, #tpu.memory_space<vmem>>, vector<1x32xf32>
    %21 = vector.broadcast %20 : vector<1x32xf32> to vector<16x32xf32>
    %22 = arith.mulf %19, %21 : vector<16x32xf32>
    %c0_7 = arith.constant 0 : index
    %c0_8 = arith.constant 0 : index
    %23 = vector.load %arg3[%c0_7, %c0_8] : memref<1x32xf32, #tpu.memory_space<vmem>>, vector<1x32xf32>
    %24 = vector.broadcast %23 : vector<1x32xf32> to vector<16x32xf32>
    %25 = arith.addf %22, %24 : vector<16x32xf32>
    %c0_9 = arith.constant 0 : index
    %c0_10 = arith.constant 0 : index
    %26 = vector.load %arg4[%c0_9, %c0_10] : memref<16x32xf32, #tpu.memory_space<vmem>>, vector<16x32xf32>
    tpu.vector_store %arg4[%c0_9, %c0_10], %25 {strides = array<i32>} : memref<16x32xf32, #tpu.memory_space<vmem>>, vector<16x32xf32>,
    return
  }
  func.func @transform_0(%arg0: i32) -> (i32, i32) {
    %c0_i32 = arith.constant 0 : i32
    %c0_i32_0 = arith.constant 0 : i32
    return %arg0, %c0_i32 : i32, i32
  }
  func.func @transform_1(%arg0: i32) -> (i32, i32) {
    %c0_i32 = arith.constant 0 : i32
    %c0_i32_0 = arith.constant 0 : i32
    %c0_i32_1 = arith.constant 0 : i32
    return %c0_i32, %c0_i32_0 : i32, i32
  }
  func.func @transform_2(%arg0: i32) -> (i32, i32) {
    %c0_i32 = arith.constant 0 : i32
    %c0_i32_0 = arith.constant 0 : i32
    %c0_i32_1 = arith.constant 0 : i32
    return %c0_i32, %c0_i32_0 : i32, i32
  }
  func.func @transform_3(%arg0: i32) -> (i32, i32) {
    %c0_i32 = arith.constant 0 : i32
    %c0_i32_0 = arith.constant 0 : i32
    return %arg0, %c0_i32 : i32, i32
  }
}

module attributes {stable_mosaic.version = 11 : i64} {
  func.func @_ln_linear_kernel(%arg0: i32, %arg1: i32, %arg2: memref<16x32xbf16, #tpu.memory_space<vmem>>, %arg3: memref<1x32xf32, #tpu.memory_space<vmem>>, %arg4: memref<1x32xf32, #tpu.memory_space<vmem>>, %arg5: memref<32x96xbf16, #tpu.memory_space<vmem>>, %arg6: memref<1x96xf32, #tpu.memory_space<vmem>>, %arg7: memref<16x96xbf16, #tpu.memory_space<vmem>>, %arg8: memref<16x32xbf16, #tpu.memory_space<vmem>>) attributes {dimension_semantics = [#tpu.dimension_semantics<parallel>, #tpu.dimension_semantics<arbitrary>], iteration_bounds = array<i64: 1, 1>, scalar_prefetch = 0 : i64, scratch_operands = 1 : i64, tpu.core_type = #tpu.core_type<tc>, window_params = [{transform_indices = @transform_0, window_bounds = array<i64: 16, 32>}, {pipeline_mode = #tpu.pipeline_mode<synchronous>, transform_indices = @transform_1, window_bounds = array<i64: 1, 32>}, {pipeline_mode = #tpu.pipeline_mode<synchronous>, transform_indices = @transform_2, window_bounds = array<i64: 1, 32>}, {transform_indices = @transform_3, window_bounds = array<i64: 32, 96>}, {transform_indices = @transform_4, window_bounds = array<i64: 1, 96>}, {transform_indices = @transform_5, window_bounds = array<i64: 16, 96>}]} {
    %c0_i32 = arith.constant 0 : i32
    %0 = arith.cmpi eq, %arg1, %c0_i32 : i32
    %1 = arith.extui %0 : i1 to i32
    %c0_i32_0 = arith.constant 0 : i32
    %2 = arith.cmpi ne, %1, %c0_i32_0 : i32
    scf.if %2 {
      %c0_8 = arith.constant 0 : index
      %c0_9 = arith.constant 0 : index
      %11 = vector.load %arg2[%c0_8, %c0_9] : memref<16x32xbf16, #tpu.memory_space<vmem>>, vector<16x32xbf16>
      %12 = arith.extf %11 : vector<16x32xbf16> to vector<16x32xf32>
      %cst_10 = arith.constant dense<0.000000e+00> : vector<16xf32>
      %13 = vector.multi_reduction <add>, %12, %cst_10 [1] : vector<16x32xf32> to vector<16xf32>
      %14 = vector.shape_cast %13 : vector<16xf32> to vector<16x1xf32>
      %cst_11 = arith.constant 3.200000e+01 : f32
      %15 = vector.broadcast %cst_11 : f32 to vector<16x1xf32>
      %16 = arith.divf %14, %15 : vector<16x1xf32>
      %17 = vector.broadcast %16 : vector<16x1xf32> to vector<16x32xf32>
      %18 = arith.subf %12, %17 : vector<16x32xf32>
      %19 = arith.mulf %18, %18 : vector<16x32xf32>
      %cst_12 = arith.constant dense<0.000000e+00> : vector<16xf32>
      %20 = vector.multi_reduction <add>, %19, %cst_12 [1] : vector<16x32xf32> to vector<16xf32>
      %21 = vector.shape_cast %20 : vector<16xf32> to vector<16x1xf32>
      %cst_13 = arith.constant 3.200000e+01 : f32
      %22 = vector.broadcast %cst_13 : f32 to vector<16x1xf32>
      %23 = arith.divf %21, %22 : vector<16x1xf32>
      %24 = vector.broadcast %16 : vector<16x1xf32> to vector<16x32xf32>
      %25 = arith.subf %12, %24 : vector<16x32xf32>
      %cst_14 = arith.constant 9.99999974E-6 : f32
      %26 = vector.broadcast %cst_14 : f32 to vector<16x1xf32>
      %27 = arith.addf %23, %26 : vector<16x1xf32>
      %28 = math.rsqrt %27 : vector<16x1xf32>
      %29 = vector.broadcast %28 : vector<16x1xf32> to vector<16x32xf32>
      %30 = arith.mulf %25, %29 : vector<16x32xf32>
      %c0_15 = arith.constant 0 : index
      %c0_16 = arith.constant 0 : index
      %31 = vector.load %arg3[%c0_15, %c0_16] : memref<1x32xf32, #tpu.memory_space<vmem>>, vector<1x32xf32>
      %32 = vector.broadcast %31 : vector<1x32xf32> to vector<16x32xf32>
      %33 = arith.mulf %30, %32 : vector<16x32xf32>
      %c0_17 = arith.constant 0 : index
      %c0_18 = arith.constant 0 : index
      %34 = vector.load %arg4[%c0_17, %c0_18] : memref<1x32xf32, #tpu.memory_space<vmem>>, vector<1x32xf32>
      %35 = vector.broadcast %34 : vector<1x32xf32> to vector<16x32xf32>
      %36 = arith.addf %33, %35 : vector<16x32xf32>
      %37 = arith.truncf %36 : vector<16x32xf32> to vector<16x32xbf16>
      %c0_19 = arith.constant 0 : index
      %c0_20 = arith.constant 0 : index
      %38 = vector.load %arg8[%c0_19, %c0_20] : memref<16x32xbf16, #tpu.memory_space<vmem>>, vector<16x32xbf16>
      tpu.vector_store %arg8[%c0_19, %c0_20], %37 {strides = array<i32>} : memref<16x32xbf16, #tpu.memory_space<vmem>>, vector<16x32xbf16>,
    } else {
    }
    %c0 = arith.constant 0 : index
    %c0_1 = arith.constant 0 : index
    %3 = vector.load %arg8[%c0, %c0_1] : memref<16x32xbf16, #tpu.memory_space<vmem>>, vector<16x32xbf16>
    %c0_2 = arith.constant 0 : index
    %c0_3 = arith.constant 0 : index
    %4 = vector.load %arg5[%c0_2, %c0_3] : memref<32x96xbf16, #tpu.memory_space<vmem>>, vector<32x96xbf16>
    %cst = arith.constant dense<0.000000e+00> : vector<16x96xf32>
    %5 = tpu.matmul %3, %4, %cst {dimension_numbers = #tpu.dot_dimension_numbers<[1], [0], [0], [1], [0, 0, 1, 1], [], []>} : vector<16x32xbf16>, vector<32x96xbf16>, vector<16x96xf32> -> vector<16x96xf32>
    %c0_4 = arith.constant 0 : index
    %c0_5 = arith.constant 0 : index
    %6 = vector.load %arg6[%c0_4, %c0_5] : memref<1x96xf32, #tpu.memory_space<vmem>>, vector<1x96xf32>
    %7 = vector.broadcast %6 : vector<1x96xf32> to vector<16x96xf32>
    %8 = arith.addf %5, %7 : vector<16x96xf32>
    %9 = arith.truncf %8 : vector<16x96xf32> to vector<16x96xbf16>
    %c0_6 = arith.constant 0 : index
    %c0_7 = arith.constant 0 : index
    %10 = vector.load %arg7[%c0_6, %c0_7] : memref<16x96xbf16, #tpu.memory_space<vmem>>, vector<16x96xbf16>
    tpu.vector_store %arg7[%c0_6, %c0_7], %9 {strides = array<i32>} : memref<16x96xbf16, #tpu.memory_space<vmem>>, vector<16x96xbf16>,
    return
  }
  func.func @transform_0(%arg0: i32, %arg1: i32) -> (i32, i32) {
    %c0_i32 = arith.constant 0 : i32
    %c0_i32_0 = arith.constant 0 : i32
    return %arg0, %c0_i32 : i32, i32
  }
  func.func @transform_1(%arg0: i32, %arg1: i32) -> (i32, i32) {
    %c0_i32 = arith.constant 0 : i32
    %c0_i32_0 = arith.constant 0 : i32
    %c0_i32_1 = arith.constant 0 : i32
    return %c0_i32, %c0_i32_0 : i32, i32
  }
  func.func @transform_2(%arg0: i32, %arg1: i32) -> (i32, i32) {
    %c0_i32 = arith.constant 0 : i32
    %c0_i32_0 = arith.constant 0 : i32
    %c0_i32_1 = arith.constant 0 : i32
    return %c0_i32, %c0_i32_0 : i32, i32
  }
  func.func @transform_3(%arg0: i32, %arg1: i32) -> (i32, i32) {
    %c0_i32 = arith.constant 0 : i32
    %c0_i32_0 = arith.constant 0 : i32
    return %c0_i32, %arg1 : i32, i32
  }
  func.func @transform_4(%arg0: i32, %arg1: i32) -> (i32, i32) {
    %c0_i32 = arith.constant 0 : i32
    %c0_i32_0 = arith.constant 0 : i32
    return %c0_i32, %arg1 : i32, i32
  }
  func.func @transform_5(%arg0: i32, %arg1: i32) -> (i32, i32) {
    %c0_i32 = arith.constant 0 : i32
    return %arg0, %arg1 : i32, i32
  }
}

module attributes {stable_mosaic.version = 11 : i64} {
  func.func @_attn_kernel(%arg0: i32, %arg1: memref<1x8x96xbf16, #tpu.memory_space<vmem>>, %arg2: memref<32x32xbf16, #tpu.memory_space<vmem>>, %arg3: memref<1x32xf32, #tpu.memory_space<vmem>>, %arg4: memref<1x8x32xbf16, #tpu.memory_space<vmem>>, %arg5: memref<1x8x32xbf16, #tpu.memory_space<vmem>>) attributes {dimension_semantics = [#tpu.dimension_semantics<parallel>], iteration_bounds = array<i64: 2>, scalar_prefetch = 0 : i64, scratch_operands = 0 : i64, tpu.core_type = #tpu.core_type<tc>, window_params = [{transform_indices = @transform_0, window_bounds = array<i64: 1, 8, 96>}, {pipeline_mode = #tpu.pipeline_mode<synchronous>, transform_indices = @transform_1, window_bounds = array<i64: 32, 32>}, {pipeline_mode = #tpu.pipeline_mode<synchronous>, transform_indices = @transform_2, window_bounds = array<i64: 1, 32>}, {transform_indices = @transform_3, window_bounds = array<i64: 1, 8, 32>}, {transform_indices = @transform_4, window_bounds = array<i64: 1, 8, 32>}]} {
    %c0 = arith.constant 0 : index
    %c0_0 = arith.constant 0 : index
    %c0_1 = arith.constant 0 : index
    %0 = vector.load %arg1[%c0, %c0_0, %c0_1] : memref<1x8x96xbf16, #tpu.memory_space<vmem>>, vector<1x8x96xbf16>
    %1 = vector.shape_cast %0 : vector<1x8x96xbf16> to vector<8x96xbf16>
    %2 = tpu.iota {dimensions = array<i32: 0>} : vector<8x8xi32>
    %3 = tpu.iota {dimensions = array<i32: 1>} : vector<8x8xi32>
    %4 = arith.cmpi sle, %3, %2 : vector<8x8xi32>
    %cst = arith.constant 0.000000e+00 : f32
    %5 = vector.broadcast %cst : f32 to vector<8x32xf32>
    %6 = vector.extract_strided_slice %1 {offsets = [0, 0], sizes = [8, 8], strides = [1, 1]} : vector<8x96xbf16> to vector<8x8xbf16>
    %7 = vector.extract_strided_slice %1 {offsets = [0, 32], sizes = [8, 8], strides = [1, 1]} : vector<8x96xbf16> to vector<8x8xbf16>
    %8 = vector.extract_strided_slice %1 {offsets = [0, 64], sizes = [8, 8], strides = [1, 1]} : vector<8x96xbf16> to vector<8x8xbf16>
    %cst_2 = arith.constant dense<0.000000e+00> : vector<8x8xf32>
    %9 = tpu.matmul %6, %7, %cst_2 {dimension_numbers = #tpu.dot_dimension_numbers<[1], [1], [0], [0], [0, 0, 1, 0], [], []>} : vector<8x8xbf16>, vector<8x8xbf16>, vector<8x8xf32> -> vector<8x8xf32>
    %cst_3 = arith.constant 0.353553385 : f32
    %10 = vector.broadcast %cst_3 : f32 to vector<8x8xf32>
    %11 = arith.mulf %9, %10 : vector<8x8xf32>
    %cst_4 = arith.constant -1.000000e+30 : f32
    %12 = vector.broadcast %cst_4 : f32 to vector<8x8xf32>
    %13 = arith.select %4, %11, %12 : vector<8x8xi1>, vector<8x8xf32>
    %cst_5 = arith.constant dense<0xFF800000> : vector<8xf32>
    %14 = vector.multi_reduction <maximumf>, %13, %cst_5 [1] : vector<8x8xf32> to vector<8xf32>
    %15 = vector.shape_cast %14 : vector<8xf32> to vector<8x1xf32>
    %16 = vector.broadcast %15 : vector<8x1xf32> to vector<8x8xf32>
    %17 = arith.subf %13, %16 : vector<8x8xf32>
    %18 = math.exp %17 : vector<8x8xf32>
    %cst_6 = arith.constant dense<0.000000e+00> : vector<8xf32>
    %19 = vector.multi_reduction <add>, %18, %cst_6 [1] : vector<8x8xf32> to vector<8xf32>
    %20 = vector.shape_cast %19 : vector<8xf32> to vector<8x1xf32>
    %21 = tpu.reciprocal %20 {approx = true} : vector<8x1xf32> -> vector<8x1xf32>
    %22 = vector.broadcast %21 : vector<8x1xf32> to vector<8x8xf32>
    %23 = arith.mulf %18, %22 : vector<8x8xf32>
    %24 = arith.truncf %23 : vector<8x8xf32> to vector<8x8xbf16>
    %cst_7 = arith.constant dense<0.000000e+00> : vector<8x8xf32>
    %25 = tpu.matmul %24, %8, %cst_7 {dimension_numbers = #tpu.dot_dimension_numbers<[1], [0], [0], [1], [0, 0, 1, 1], [], []>} : vector<8x8xbf16>, vector<8x8xbf16>, vector<8x8xf32> -> vector<8x8xf32>
    %26 = arith.truncf %25 : vector<8x8xf32> to vector<8x8xbf16>
    %c0_8 = arith.constant 0 : index
    %c0_9 = arith.constant 0 : index
    %27 = vector.load %arg2[%c0_8, %c0_9] : memref<32x32xbf16, #tpu.memory_space<vmem>>, vector<8x32xbf16>
    %cst_10 = arith.constant dense<0.000000e+00> : vector<8x32xf32>
    %28 = tpu.matmul %26, %27, %cst_10 {dimension_numbers = #tpu.dot_dimension_numbers<[1], [0], [0], [1], [0, 0, 1, 1], [], []>} : vector<8x8xbf16>, vector<8x32xbf16>, vector<8x32xf32> -> vector<8x32xf32>
    %29 = arith.addf %5, %28 : vector<8x32xf32>
    %30 = vector.extract_strided_slice %1 {offsets = [0, 8], sizes = [8, 8], strides = [1, 1]} : vector<8x96xbf16> to vector<8x8xbf16>
    %31 = vector.extract_strided_slice %1 {offsets = [0, 40], sizes = [8, 8], strides = [1, 1]} : vector<8x96xbf16> to vector<8x8xbf16>
    %32 = vector.extract_strided_slice %1 {offsets = [0, 72], sizes = [8, 8], strides = [1, 1]} : vector<8x96xbf16> to vector<8x8xbf16>
    %cst_11 = arith.constant dense<0.000000e+00> : vector<8x8xf32>
    %33 = tpu.matmul %30, %31, %cst_11 {dimension_numbers = #tpu.dot_dimension_numbers<[1], [1], [0], [0], [0, 0, 1, 0], [], []>} : vector<8x8xbf16>, vector<8x8xbf16>, vector<8x8xf32> -> vector<8x8xf32>
    %cst_12 = arith.constant 0.353553385 : f32
    %34 = vector.broadcast %cst_12 : f32 to vector<8x8xf32>
    %35 = arith.mulf %33, %34 : vector<8x8xf32>
    %cst_13 = arith.constant -1.000000e+30 : f32
    %36 = vector.broadcast %cst_13 : f32 to vector<8x8xf32>
    %37 = arith.select %4, %35, %36 : vector<8x8xi1>, vector<8x8xf32>
    %cst_14 = arith.constant dense<0xFF800000> : vector<8xf32>
    %38 = vector.multi_reduction <maximumf>, %37, %cst_14 [1] : vector<8x8xf32> to vector<8xf32>
    %39 = vector.shape_cast %38 : vector<8xf32> to vector<8x1xf32>
    %40 = vector.broadcast %39 : vector<8x1xf32> to vector<8x8xf32>
    %41 = arith.subf %37, %40 : vector<8x8xf32>
    %42 = math.exp %41 : vector<8x8xf32>
    %cst_15 = arith.constant dense<0.000000e+00> : vector<8xf32>
    %43 = vector.multi_reduction <add>, %42, %cst_15 [1] : vector<8x8xf32> to vector<8xf32>
    %44 = vector.shape_cast %43 : vector<8xf32> to vector<8x1xf32>
    %45 = tpu.reciprocal %44 {approx = true} : vector<8x1xf32> -> vector<8x1xf32>
    %46 = vector.broadcast %45 : vector<8x1xf32> to vector<8x8xf32>
    %47 = arith.mulf %42, %46 : vector<8x8xf32>
    %48 = arith.truncf %47 : vector<8x8xf32> to vector<8x8xbf16>
    %cst_16 = arith.constant dense<0.000000e+00> : vector<8x8xf32>
    %49 = tpu.matmul %48, %32, %cst_16 {dimension_numbers = #tpu.dot_dimension_numbers<[1], [0], [0], [1], [0, 0, 1, 1], [], []>} : vector<8x8xbf16>, vector<8x8xbf16>, vector<8x8xf32> -> vector<8x8xf32>
    %50 = arith.truncf %49 : vector<8x8xf32> to vector<8x8xbf16>
    %c8 = arith.constant 8 : index
    %c0_17 = arith.constant 0 : index
    %51 = vector.load %arg2[%c8, %c0_17] : memref<32x32xbf16, #tpu.memory_space<vmem>>, vector<8x32xbf16>
    %cst_18 = arith.constant dense<0.000000e+00> : vector<8x32xf32>
    %52 = tpu.matmul %50, %51, %cst_18 {dimension_numbers = #tpu.dot_dimension_numbers<[1], [0], [0], [1], [0, 0, 1, 1], [], []>} : vector<8x8xbf16>, vector<8x32xbf16>, vector<8x32xf32> -> vector<8x32xf32>
    %53 = arith.addf %29, %52 : vector<8x32xf32>
    %54 = vector.extract_strided_slice %1 {offsets = [0, 16], sizes = [8, 8], strides = [1, 1]} : vector<8x96xbf16> to vector<8x8xbf16>
    %55 = vector.extract_strided_slice %1 {offsets = [0, 48], sizes = [8, 8], strides = [1, 1]} : vector<8x96xbf16> to vector<8x8xbf16>
    %56 = vector.extract_strided_slice %1 {offsets = [0, 80], sizes = [8, 8], strides = [1, 1]} : vector<8x96xbf16> to vector<8x8xbf16>
    %cst_19 = arith.constant dense<0.000000e+00> : vector<8x8xf32>
    %57 = tpu.matmul %54, %55, %cst_19 {dimension_numbers = #tpu.dot_dimension_numbers<[1], [1], [0], [0], [0, 0, 1, 0], [], []>} : vector<8x8xbf16>, vector<8x8xbf16>, vector<8x8xf32> -> vector<8x8xf32>
    %cst_20 = arith.constant 0.353553385 : f32
    %58 = vector.broadcast %cst_20 : f32 to vector<8x8xf32>
    %59 = arith.mulf %57, %58 : vector<8x8xf32>
    %cst_21 = arith.constant -1.000000e+30 : f32
    %60 = vector.broadcast %cst_21 : f32 to vector<8x8xf32>
    %61 = arith.select %4, %59, %60 : vector<8x8xi1>, vector<8x8xf32>
    %cst_22 = arith.constant dense<0xFF800000> : vector<8xf32>
    %62 = vector.multi_reduction <maximumf>, %61, %cst_22 [1] : vector<8x8xf32> to vector<8xf32>
    %63 = vector.shape_cast %62 : vector<8xf32> to vector<8x1xf32>
    %64 = vector.broadcast %63 : vector<8x1xf32> to vector<8x8xf32>
    %65 = arith.subf %61, %64 : vector<8x8xf32>
    %66 = math.exp %65 : vector<8x8xf32>
    %cst_23 = arith.constant dense<0.000000e+00> : vector<8xf32>
    %67 = vector.multi_reduction <add>, %66, %cst_23 [1] : vector<8x8xf32> to vector<8xf32>
    %68 = vector.shape_cast %67 : vector<8xf32> to vector<8x1xf32>
    %69 = tpu.reciprocal %68 {approx = true} : vector<8x1xf32> -> vector<8x1xf32>
    %70 = vector.broadcast %69 : vector<8x1xf32> to vector<8x8xf32>
    %71 = arith.mulf %66, %70 : vector<8x8xf32>
    %72 = arith.truncf %71 : vector<8x8xf32> to vector<8x8xbf16>
    %cst_24 = arith.constant dense<0.000000e+00> : vector<8x8xf32>
    %73 = tpu.matmul %72, %56, %cst_24 {dimension_numbers = #tpu.dot_dimension_numbers<[1], [0], [0], [1], [0, 0, 1, 1], [], []>} : vector<8x8xbf16>, vector<8x8xbf16>, vector<8x8xf32> -> vector<8x8xf32>
    %74 = arith.truncf %73 : vector<8x8xf32> to vector<8x8xbf16>
    %c16 = arith.constant 16 : index
    %c0_25 = arith.constant 0 : index
    %75 = vector.load %arg2[%c16, %c0_25] : memref<32x32xbf16, #tpu.memory_space<vmem>>, vector<8x32xbf16>
    %cst_26 = arith.constant dense<0.000000e+00> : vector<8x32xf32>
    %76 = tpu.matmul %74, %75, %cst_26 {dimension_numbers = #tpu.dot_dimension_numbers<[1], [0], [0], [1], [0, 0, 1, 1], [], []>} : vector<8x8xbf16>, vector<8x32xbf16>, vector<8x32xf32> -> vector<8x32xf32>
    %77 = arith.addf %53, %76 : vector<8x32xf32>
    %78 = vector.extract_strided_slice %1 {offsets = [0, 24], sizes = [8, 8], strides = [1, 1]} : vector<8x96xbf16> to vector<8x8xbf16>
    %79 = vector.extract_strided_slice %1 {offsets = [0, 56], sizes = [8, 8], strides = [1, 1]} : vector<8x96xbf16> to vector<8x8xbf16>
    %80 = vector.extract_strided_slice %1 {offsets = [0, 88], sizes = [8, 8], strides = [1, 1]} : vector<8x96xbf16> to vector<8x8xbf16>
    %cst_27 = arith.constant dense<0.000000e+00> : vector<8x8xf32>
    %81 = tpu.matmul %78, %79, %cst_27 {dimension_numbers = #tpu.dot_dimension_numbers<[1], [1], [0], [0], [0, 0, 1, 0], [], []>} : vector<8x8xbf16>, vector<8x8xbf16>, vector<8x8xf32> -> vector<8x8xf32>
    %cst_28 = arith.constant 0.353553385 : f32
    %82 = vector.broadcast %cst_28 : f32 to vector<8x8xf32>
    %83 = arith.mulf %81, %82 : vector<8x8xf32>
    %cst_29 = arith.constant -1.000000e+30 : f32
    %84 = vector.broadcast %cst_29 : f32 to vector<8x8xf32>
    %85 = arith.select %4, %83, %84 : vector<8x8xi1>, vector<8x8xf32>
    %cst_30 = arith.constant dense<0xFF800000> : vector<8xf32>
    %86 = vector.multi_reduction <maximumf>, %85, %cst_30 [1] : vector<8x8xf32> to vector<8xf32>
    %87 = vector.shape_cast %86 : vector<8xf32> to vector<8x1xf32>
    %88 = vector.broadcast %87 : vector<8x1xf32> to vector<8x8xf32>
    %89 = arith.subf %85, %88 : vector<8x8xf32>
    %90 = math.exp %89 : vector<8x8xf32>
    %cst_31 = arith.constant dense<0.000000e+00> : vector<8xf32>
    %91 = vector.multi_reduction <add>, %90, %cst_31 [1] : vector<8x8xf32> to vector<8xf32>
    %92 = vector.shape_cast %91 : vector<8xf32> to vector<8x1xf32>
    %93 = tpu.reciprocal %92 {approx = true} : vector<8x1xf32> -> vector<8x1xf32>
    %94 = vector.broadcast %93 : vector<8x1xf32> to vector<8x8xf32>
    %95 = arith.mulf %90, %94 : vector<8x8xf32>
    %96 = arith.truncf %95 : vector<8x8xf32> to vector<8x8xbf16>
    %cst_32 = arith.constant dense<0.000000e+00> : vector<8x8xf32>
    %97 = tpu.matmul %96, %80, %cst_32 {dimension_numbers = #tpu.dot_dimension_numbers<[1], [0], [0], [1], [0, 0, 1, 1], [], []>} : vector<8x8xbf16>, vector<8x8xbf16>, vector<8x8xf32> -> vector<8x8xf32>
    %98 = arith.truncf %97 : vector<8x8xf32> to vector<8x8xbf16>
    %c24 = arith.constant 24 : index
    %c0_33 = arith.constant 0 : index
    %99 = vector.load %arg2[%c24, %c0_33] : memref<32x32xbf16, #tpu.memory_space<vmem>>, vector<8x32xbf16>
    %cst_34 = arith.constant dense<0.000000e+00> : vector<8x32xf32>
    %100 = tpu.matmul %98, %99, %cst_34 {dimension_numbers = #tpu.dot_dimension_numbers<[1], [0], [0], [1], [0, 0, 1, 1], [], []>} : vector<8x8xbf16>, vector<8x32xbf16>, vector<8x32xf32> -> vector<8x32xf32>
    %101 = arith.addf %77, %100 : vector<8x32xf32>
    %c0_35 = arith.constant 0 : index
    %c0_36 = arith.constant 0 : index
    %102 = vector.load %arg3[%c0_35, %c0_36] : memref<1x32xf32, #tpu.memory_space<vmem>>, vector<1x32xf32>
    %103 = vector.broadcast %102 : vector<1x32xf32> to vector<8x32xf32>
    %104 = arith.addf %101, %103 : vector<8x32xf32>
    %c0_37 = arith.constant 0 : index
    %c0_38 = arith.constant 0 : index
    %c0_39 = arith.constant 0 : index
    %105 = vector.load %arg4[%c0_37, %c0_38, %c0_39] : memref<1x8x32xbf16, #tpu.memory_space<vmem>>, vector<1x8x32xbf16>
    %106 = vector.shape_cast %105 : vector<1x8x32xbf16> to vector<8x32xbf16>
    %107 = arith.extf %106 : vector<8x32xbf16> to vector<8x32xf32>
    %108 = arith.addf %104, %107 : vector<8x32xf32>
    %109 = arith.truncf %108 : vector<8x32xf32> to vector<8x32xbf16>
    %c0_40 = arith.constant 0 : index
    %c0_41 = arith.constant 0 : index
    %c0_42 = arith.constant 0 : index
    %110 = vector.load %arg5[%c0_40, %c0_41, %c0_42] : memref<1x8x32xbf16, #tpu.memory_space<vmem>>, vector<1x8x32xbf16>
    %111 = vector.shape_cast %110 : vector<1x8x32xbf16> to vector<8x32xbf16>
    %112 = vector.shape_cast %109 : vector<8x32xbf16> to vector<1x8x32xbf16>
    tpu.vector_store %arg5[%c0_40, %c0_41, %c0_42], %112 {strides = array<i32>} : memref<1x8x32xbf16, #tpu.memory_space<vmem>>, vector<1x8x32xbf16>,
    return
  }
  func.func @transform_0(%arg0: i32) -> (i32, i32, i32) {
    %c0_i32 = arith.constant 0 : i32
    %c0_i32_0 = arith.constant 0 : i32
    %c0_i32_1 = arith.constant 0 : i32
    return %arg0, %c0_i32, %c0_i32_0 : i32, i32, i32
  }
  func.func @transform_1(%arg0: i32) -> (i32, i32) {
    %c0_i32 = arith.constant 0 : i32
    %c0_i32_0 = arith.constant 0 : i32
    %c0_i32_1 = arith.constant 0 : i32
    return %c0_i32, %c0_i32_0 : i32, i32
  }
  func.func @transform_2(%arg0: i32) -> (i32, i32) {
    %c0_i32 = arith.constant 0 : i32
    %c0_i32_0 = arith.constant 0 : i32
    %c0_i32_1 = arith.constant 0 : i32
    return %c0_i32, %c0_i32_0 : i32, i32
  }
  func.func @transform_3(%arg0: i32) -> (i32, i32, i32) {
    %c0_i32 = arith.constant 0 : i32
    %c0_i32_0 = arith.constant 0 : i32
    %c0_i32_1 = arith.constant 0 : i32
    return %arg0, %c0_i32, %c0_i32_0 : i32, i32, i32
  }
  func.func @transform_4(%arg0: i32) -> (i32, i32, i32) {
    %c0_i32 = arith.constant 0 : i32
    %c0_i32_0 = arith.constant 0 : i32
    %c0_i32_1 = arith.constant 0 : i32
    return %arg0, %c0_i32, %c0_i32_0 : i32, i32, i32
  }
}

module attributes {stable_mosaic.version = 11 : i64} {
  func.func @_ln_mlp_kernel(%arg0: i32, %arg1: i32, %arg2: memref<16x32xbf16, #tpu.memory_space<vmem>>, %arg3: memref<1x32xf32, #tpu.memory_space<vmem>>, %arg4: memref<1x32xf32, #tpu.memory_space<vmem>>, %arg5: memref<32x128xbf16, #tpu.memory_space<vmem>>, %arg6: memref<1x128xf32, #tpu.memory_space<vmem>>, %arg7: memref<128x32xbf16, #tpu.memory_space<vmem>>, %arg8: memref<1x32xf32, #tpu.memory_space<vmem>>, %arg9: memref<16x32xbf16, #tpu.memory_space<vmem>>, %arg10: memref<16x32xbf16, #tpu.memory_space<vmem>>, %arg11: memref<16x32xf32, #tpu.memory_space<vmem>>) attributes {dimension_semantics = [#tpu.dimension_semantics<parallel>, #tpu.dimension_semantics<arbitrary>], iteration_bounds = array<i64: 1, 1>, scalar_prefetch = 0 : i64, scratch_operands = 2 : i64, tpu.core_type = #tpu.core_type<tc>, window_params = [{transform_indices = @transform_0, window_bounds = array<i64: 16, 32>}, {pipeline_mode = #tpu.pipeline_mode<synchronous>, transform_indices = @transform_1, window_bounds = array<i64: 1, 32>}, {pipeline_mode = #tpu.pipeline_mode<synchronous>, transform_indices = @transform_2, window_bounds = array<i64: 1, 32>}, {transform_indices = @transform_3, window_bounds = array<i64: 32, 128>}, {transform_indices = @transform_4, window_bounds = array<i64: 1, 128>}, {transform_indices = @transform_5, window_bounds = array<i64: 128, 32>}, {pipeline_mode = #tpu.pipeline_mode<synchronous>, transform_indices = @transform_6, window_bounds = array<i64: 1, 32>}, {transform_indices = @transform_7, window_bounds = array<i64: 16, 32>}]} {
    %c0_i32 = arith.constant 0 : i32
    %0 = arith.cmpi eq, %arg1, %c0_i32 : i32
    %1 = arith.extui %0 : i1 to i32
    %c0_i32_0 = arith.constant 0 : i32
    %2 = arith.cmpi ne, %1, %c0_i32_0 : i32
    scf.if %2 {
      %c0_18 = arith.constant 0 : index
      %c0_19 = arith.constant 0 : index
      %26 = vector.load %arg2[%c0_18, %c0_19] : memref<16x32xbf16, #tpu.memory_space<vmem>>, vector<16x32xbf16>
      %27 = arith.extf %26 : vector<16x32xbf16> to vector<16x32xf32>
      %cst_20 = arith.constant dense<0.000000e+00> : vector<16xf32>
      %28 = vector.multi_reduction <add>, %27, %cst_20 [1] : vector<16x32xf32> to vector<16xf32>
      %29 = vector.shape_cast %28 : vector<16xf32> to vector<16x1xf32>
      %cst_21 = arith.constant 3.200000e+01 : f32
      %30 = vector.broadcast %cst_21 : f32 to vector<16x1xf32>
      %31 = arith.divf %29, %30 : vector<16x1xf32>
      %32 = vector.broadcast %31 : vector<16x1xf32> to vector<16x32xf32>
      %33 = arith.subf %27, %32 : vector<16x32xf32>
      %34 = arith.mulf %33, %33 : vector<16x32xf32>
      %cst_22 = arith.constant dense<0.000000e+00> : vector<16xf32>
      %35 = vector.multi_reduction <add>, %34, %cst_22 [1] : vector<16x32xf32> to vector<16xf32>
      %36 = vector.shape_cast %35 : vector<16xf32> to vector<16x1xf32>
      %cst_23 = arith.constant 3.200000e+01 : f32
      %37 = vector.broadcast %cst_23 : f32 to vector<16x1xf32>
      %38 = arith.divf %36, %37 : vector<16x1xf32>
      %39 = vector.broadcast %31 : vector<16x1xf32> to vector<16x32xf32>
      %40 = arith.subf %27, %39 : vector<16x32xf32>
      %cst_24 = arith.constant 9.99999974E-6 : f32
      %41 = vector.broadcast %cst_24 : f32 to vector<16x1xf32>
      %42 = arith.addf %38, %41 : vector<16x1xf32>
      %43 = math.rsqrt %42 : vector<16x1xf32>
      %44 = vector.broadcast %43 : vector<16x1xf32> to vector<16x32xf32>
      %45 = arith.mulf %40, %44 : vector<16x32xf32>
      %c0_25 = arith.constant 0 : index
      %c0_26 = arith.constant 0 : index
      %46 = vector.load %arg3[%c0_25, %c0_26] : memref<1x32xf32, #tpu.memory_space<vmem>>, vector<1x32xf32>
      %47 = vector.broadcast %46 : vector<1x32xf32> to vector<16x32xf32>
      %48 = arith.mulf %45, %47 : vector<16x32xf32>
      %c0_27 = arith.constant 0 : index
      %c0_28 = arith.constant 0 : index
      %49 = vector.load %arg4[%c0_27, %c0_28] : memref<1x32xf32, #tpu.memory_space<vmem>>, vector<1x32xf32>
      %50 = vector.broadcast %49 : vector<1x32xf32> to vector<16x32xf32>
      %51 = arith.addf %48, %50 : vector<16x32xf32>
      %52 = arith.truncf %51 : vector<16x32xf32> to vector<16x32xbf16>
      %c0_29 = arith.constant 0 : index
      %c0_30 = arith.constant 0 : index
      %53 = vector.load %arg10[%c0_29, %c0_30] : memref<16x32xbf16, #tpu.memory_space<vmem>>, vector<16x32xbf16>
      tpu.vector_store %arg10[%c0_29, %c0_30], %52 {strides = array<i32>} : memref<16x32xbf16, #tpu.memory_space<vmem>>, vector<16x32xbf16>,
      %cst_31 = arith.constant 0.000000e+00 : f32
      %54 = vector.broadcast %cst_31 : f32 to vector<16x32xf32>
      %c0_32 = arith.constant 0 : index
      %c0_33 = arith.constant 0 : index
      %55 = vector.load %arg11[%c0_32, %c0_33] : memref<16x32xf32, #tpu.memory_space<vmem>>, vector<16x32xf32>
      tpu.vector_store %arg11[%c0_32, %c0_33], %54 {strides = array<i32>} : memref<16x32xf32, #tpu.memory_space<vmem>>, vector<16x32xf32>,
    } else {
    }
    %c0 = arith.constant 0 : index
    %c0_1 = arith.constant 0 : index
    %3 = vector.load %arg10[%c0, %c0_1] : memref<16x32xbf16, #tpu.memory_space<vmem>>, vector<16x32xbf16>
    %c0_2 = arith.constant 0 : index
    %c0_3 = arith.constant 0 : index
    %4 = vector.load %arg5[%c0_2, %c0_3] : memref<32x128xbf16, #tpu.memory_space<vmem>>, vector<32x128xbf16>
    %cst = arith.constant dense<0.000000e+00> : vector<16x128xf32>
    %5 = tpu.matmul %3, %4, %cst {dimension_numbers = #tpu.dot_dimension_numbers<[1], [0], [0], [1], [0, 0, 1, 1], [], []>} : vector<16x32xbf16>, vector<32x128xbf16>, vector<16x128xf32> -> vector<16x128xf32>
    %c0_4 = arith.constant 0 : index
    %c0_5 = arith.constant 0 : index
    %6 = vector.load %arg6[%c0_4, %c0_5] : memref<1x128xf32, #tpu.memory_space<vmem>>, vector<1x128xf32>
    %7 = vector.broadcast %6 : vector<1x128xf32> to vector<16x128xf32>
    %8 = arith.addf %5, %7 : vector<16x128xf32>
    %cst_6 = arith.constant 5.000000e-01 : f32
    %9 = vector.broadcast %cst_6 : f32 to vector<16x128xf32>
    %10 = arith.mulf %9, %8 : vector<16x128xf32>
    %cst_7 = arith.constant 0.707106769 : f32
    %11 = vector.broadcast %cst_7 : f32 to vector<16x128xf32>
    %12 = arith.mulf %8, %11 : vector<16x128xf32>
    %13 = math.erf %12 : vector<16x128xf32>
    %cst_8 = arith.constant 1.000000e+00 : f32
    %14 = vector.broadcast %cst_8 : f32 to vector<16x128xf32>
    %15 = arith.addf %14, %13 : vector<16x128xf32>
    %16 = arith.mulf %10, %15 : vector<16x128xf32>
    %c0_9 = arith.constant 0 : index
    %c0_10 = arith.constant 0 : index
    %17 = vector.load %arg11[%c0_9, %c0_10] : memref<16x32xf32, #tpu.memory_space<vmem>>, vector<16x32xf32>
    %18 = arith.truncf %16 : vector<16x128xf32> to vector<16x128xbf16>
    %c0_11 = arith.constant 0 : index
    %c0_12 = arith.constant 0 : index
    %19 = vector.load %arg7[%c0_11, %c0_12] : memref<128x32xbf16, #tpu.memory_space<vmem>>, vector<128x32xbf16>
    %cst_13 = arith.constant dense<0.000000e+00> : vector<16x32xf32>
    %20 = tpu.matmul %18, %19, %cst_13 {dimension_numbers = #tpu.dot_dimension_numbers<[1], [0], [0], [1], [0, 0, 1, 1], [], []>} : vector<16x128xbf16>, vector<128x32xbf16>, vector<16x32xf32> -> vector<16x32xf32>
    %21 = arith.addf %17, %20 : vector<16x32xf32>
    %c0_14 = arith.constant 0 : index
    %c0_15 = arith.constant 0 : index
    %22 = vector.load %arg11[%c0_14, %c0_15] : memref<16x32xf32, #tpu.memory_space<vmem>>, vector<16x32xf32>
    tpu.vector_store %arg11[%c0_14, %c0_15], %21 {strides = array<i32>} : memref<16x32xf32, #tpu.memory_space<vmem>>, vector<16x32xf32>,
    %c0_i32_16 = arith.constant 0 : i32
    %23 = arith.cmpi eq, %arg1, %c0_i32_16 : i32
    %24 = arith.extui %23 : i1 to i32
    %c0_i32_17 = arith.constant 0 : i32
    %25 = arith.cmpi ne, %24, %c0_i32_17 : i32
    scf.if %25 {
      %c0_18 = arith.constant 0 : index
      %c0_19 = arith.constant 0 : index
      %26 = vector.load %arg2[%c0_18, %c0_19] : memref<16x32xbf16, #tpu.memory_space<vmem>>, vector<16x32xbf16>
      %27 = arith.extf %26 : vector<16x32xbf16> to vector<16x32xf32>
      %c0_20 = arith.constant 0 : index
      %c0_21 = arith.constant 0 : index
      %28 = vector.load %arg11[%c0_20, %c0_21] : memref<16x32xf32, #tpu.memory_space<vmem>>, vector<16x32xf32>
      %29 = arith.addf %27, %28 : vector<16x32xf32>
      %c0_22 = arith.constant 0 : index
      %c0_23 = arith.constant 0 : index
      %30 = vector.load %arg8[%c0_22, %c0_23] : memref<1x32xf32, #tpu.memory_space<vmem>>, vector<1x32xf32>
      %31 = vector.broadcast %30 : vector<1x32xf32> to vector<16x32xf32>
      %32 = arith.addf %29, %31 : vector<16x32xf32>
      %33 = arith.truncf %32 : vector<16x32xf32> to vector<16x32xbf16>
      %c0_24 = arith.constant 0 : index
      %c0_25 = arith.constant 0 : index
      %34 = vector.load %arg9[%c0_24, %c0_25] : memref<16x32xbf16, #tpu.memory_space<vmem>>, vector<16x32xbf16>
      tpu.vector_store %arg9[%c0_24, %c0_25], %33 {strides = array<i32>} : memref<16x32xbf16, #tpu.memory_space<vmem>>, vector<16x32xbf16>,
    } else {
    }
    return
  }
  func.func @transform_0(%arg0: i32, %arg1: i32) -> (i32, i32) {
    %c0_i32 = arith.constant 0 : i32
    %c0_i32_0 = arith.constant 0 : i32
    return %arg0, %c0_i32 : i32, i32
  }
  func.func @transform_1(%arg0: i32, %arg1: i32) -> (i32, i32) {
    %c0_i32 = arith.constant 0 : i32
    %c0_i32_0 = arith.constant 0 : i32
    %c0_i32_1 = arith.constant 0 : i32
    return %c0_i32, %c0_i32_0 : i32, i32
  }
  func.func @transform_2(%arg0: i32, %arg1: i32) -> (i32, i32) {
    %c0_i32 = arith.constant 0 : i32
    %c0_i32_0 = arith.constant 0 : i32
    %c0_i32_1 = arith.constant 0 : i32
    return %c0_i32, %c0_i32_0 : i32, i32
  }
  func.func @transform_3(%arg0: i32, %arg1: i32) -> (i32, i32) {
    %c0_i32 = arith.constant 0 : i32
    %c0_i32_0 = arith.constant 0 : i32
    return %c0_i32, %arg1 : i32, i32
  }
  func.func @transform_4(%arg0: i32, %arg1: i32) -> (i32, i32) {
    %c0_i32 = arith.constant 0 : i32
    %c0_i32_0 = arith.constant 0 : i32
    return %c0_i32, %arg1 : i32, i32
  }
  func.func @transform_5(%arg0: i32, %arg1: i32) -> (i32, i32) {
    %c0_i32 = arith.constant 0 : i32
    %c0_i32_0 = arith.constant 0 : i32
    return %arg1, %c0_i32 : i32, i32
  }
  func.func @transform_6(%arg0: i32, %arg1: i32) -> (i32, i32) {
    %c0_i32 = arith.constant 0 : i32
    %c0_i32_0 = arith.constant 0 : i32
    %c0_i32_1 = arith.constant 0 : i32
    return %c0_i32, %c0_i32_0 : i32, i32
  }
  func.func @transform_7(%arg0: i32, %arg1: i32) -> (i32, i32) {
    %c0_i32 = arith.constant 0 : i32
    %c0_i32_0 = arith.constant 0 : i32
    return %arg0, %c0_i32 : i32, i32
  }
}

</mosaic_0001>

<bundles_post_ra>
// kernel: encode_with_transformer.7
= control target key start
LH: loop header
LB: loop body
LE: loop exit
PB: predicated region body
PF: predicated region fallthrough
CT: control target
= control target key end

     0   :  { %vm29_vm0 = vcmask 261120   ;;  %v194_v16 = vmov 0.0   ;;  %vm195_vm1 = vmmov 0   ;;  %vm154_vm2 = vcmask 781312   ;;  %s256_s0 = inlined_call_operand.vmem [shape: bf16[16,32], index: 0, kind: input, shape index: {}]   ;;  %s257_s3 = inlined_call_operand.vmem [shape: bf16[32,96], index: 3, kind: input, shape index: {}]   ;;  %s258_s1 = inlined_call_operand.vmem [shape: f32[1,32], index: 1, kind: input, shape index: {}]   ;;  %s259_s2 = inlined_call_operand.vmem [shape: f32[1,32], index: 2, kind: input, shape index: {}]   ;;  %s260_s4 = inlined_call_operand.vmem [shape: f32[1,96], index: 4, kind: input, shape index: {}]   ;;  %s261_s5 = inlined_call_operand.vmem [shape: bf16[16,96], index: 5, kind: output, shape index: {}]  }
   0x1   :  { %v172_v0 = vld [vmem:[%s256_s0] sm:$0xff]   ;;  %178 = vmatprep.subr.bf16.mxu0 %v194_v16  ;;  %v189_v17 = vld [vmem:[%s257_s3 + $0x8] sm:$0xff]   ;;  %182 = vmatprep.mubr.msk.bf16.mxu0 %vm195_vm1, %v194_v16 }
   0x2   :  { %v173_v1 = vunpack.c.l.bf16 %v172_v0  ;;  %v174_v2 = vunpack.c.h.bf16 %v172_v0  ;;  %v188_v15 = vld [vmem:[%s257_s3] sm:$0xff]  }
   0x3   :  { %179 = vmatpush3.bf16.msra.mxu0 %v188_v15  ;;  %v161_v26 = vld [vmem:[%s258_s1] ss:$0 sm:$0xff] }
   0x4   :  { %v30_v3 = vsel %vm29_vm0, %v173_v1, 0.0  ;;  %v33_v4 = vsel %vm29_vm0, %v174_v2, 0.0  ;;  %180 = vmatprep.subr.bf16.mxu0 %v194_v16  ;;  %v162_v30 = vld [vmem:[%s259_s2] ss:$0 sm:$0xff] }
   0x5   :  { %31 = vadd.xlane.f32.xlu0 %v30_v3  ;;  %v163_v36 = vld [vmem:[%s260_s4] ss:$0 sm:$0xff] }
   0x7   :  { %181 = vmatpush3.bf16.msra.mxu0 %v189_v17 }
   0x9   :  { %34 = vadd.xlane.f32.xlu0 %v33_v4 }
  0x92   :  { %v32_v5 = vpop.xlane.xlu0 %31 }
  0x93   :  { %v37_v6 = vmul.f32 0.03125, %v32_v5 }
  0x95   :  { %v39_v7 = vsub.f32 %v173_v1, %v37_v6 }
  0x96   :  { %v35_v8 = vpop.xlane.xlu0 %34 }
  0x97   :  { %v38_v9 = vmul.f32 0.03125, %v35_v8  ;;  %v41_v10 = vmul.f32 %v39_v7, %v39_v7 }
  0x99   :  { %v40_v11 = vsub.f32 %v174_v2, %v38_v9  ;;  %v43_v12 = vsel %vm29_vm0, %v41_v10, 0.0 }
  0x9a   :  { %44 = vadd.xlane.f32.xlu1 %v43_v12 }
  0x9b   :  { %v42_v13 = vmul.f32 %v40_v11, %v40_v11 }
  0x9d   :  { %v46_v14 = vsel %vm29_vm0, %v42_v13, 0.0 }
  0x9e   :  { %47 = vadd.xlane.f32.xlu1 %v46_v14 }
 0x127   :  { %v45_v18 = vpop.xlane.xlu1 %44 }
 0x128   :  { %v49_v19 = vmul.f32 0.03125, %v45_v18 }
 0x12a   :  { %v51_v20 = vadd.f32 1e-05, %v49_v19 }
 0x12b   :  { %v48_v21 = vpop.xlane.xlu1 %47 }
 0x12c   :  { %190 = vrsqrt.f32 %v51_v20  ;;  %v50_v22 = vmul.f32 0.03125, %v48_v21 }
 0x12e   :  { %v52_v23 = vadd.f32 1e-05, %v50_v22 }
 0x130   :  { %192 = vrsqrt.f32 %v52_v23 }
 0x136   :  { %v191_v24 = vpop.eup %190 }
 0x137   :  { %v55_v25 = vmul.f32 %v191_v24, %v39_v7 }
 0x139   :  { %v64_v28 = vmul.f32 %v161_v26, %v55_v25 }
 0x13a   :  { %v193_v27 = vpop.eup %192 }
 0x13b   :  { %v56_v29 = vmul.f32 %v193_v27, %v40_v11  ;;  %v73_v32 = vadd.f32 %v162_v30, %v64_v28 }
 0x13d   :  { %v65_v31 = vmul.f32 %v161_v26, %v56_v29 }
 0x13f   :  { %v74_v33 = vadd.f32 %v162_v30, %v65_v31 }
 0x141   :  { %v75_v34 = vpack.c.bf16 %v74_v33, %v73_v32 }
 0x143   :  { %76 = vst.msk [vmem:[#allocation2] sm:$0xff] %vm29_vm0, %v75_v34 }
 0x14a   :  { %v77_v35 = vld [vmem:[#allocation2] sm:$0xff] }
 0x14b   :  { %183 = vmatmul.mubr.msk.bf16.vlgmr.msra.gmra.mrb[0].mxu0 %vm29_vm0, %v77_v35 }
 0x21e   :  { %v139_v37 = vpop.f32.mrb[0].mxu0 }
 0x21f   :  { %v140_v38 = vadd.f32 %v163_v36, %v139_v37  ;;  %v184_v39 = vpop.f32.mrb[1].mxu0 }
 0x220   :  { %v142_v40 = vpop.f32.mrb[2].mxu0 }
 0x221   :  { %v169_v41 = vpack.c.bf16 %v140_v38, %v140_v38  ;;  %v143_v42 = vadd.f32 %v163_v36, %v142_v40  ;;  %v185_v43 = vpop.f32.mrb[3].mxu0 }
 0x223   :  { %155 = vst.msk [vmem:[%s261_s5] sm:$0xf] %vm154_vm2, %v169_v41  ;;  %v170_v44 = vpack.c.bf16 %v143_v42, %v143_v42 }
 0x225   :  { %156 = vst.msk [vmem:[%s261_s5 + $0x4] sm:$0xf] %vm154_vm2, %v170_v44 }

// kernel: encode_with_transformer.13
= control target key start
LH: loop header
LB: loop body
LE: loop exit
PB: predicated region body
PF: predicated region fallthrough
CT: control target
= control target key end

     0   :  { %vm19_vm0 = vcmask 261120   ;;  %s170_s0 = inlined_call_operand.vmem [shape: bf16[16,32], index: 0, kind: input, shape index: {}]   ;;  %s171_s1 = inlined_call_operand.vmem [shape: f32[1,32], index: 1, kind: input, shape index: {}]   ;;  %s172_s2 = inlined_call_operand.vmem [shape: f32[1,32], index: 2, kind: input, shape index: {}]   ;;  %s173_s3 = inlined_call_operand.hbm [shape: f32[16,32], index: 3, kind: output, shape index: {}]  }
   0x1   :  { %v86_v0 = vld [vmem:[%s170_s0] sm:$0xff]  }
   0x2   :  { %8 = vsyncpa [#allocation3], 0  ;;  %v87_v1 = vunpack.c.l.bf16 %v86_v0  ;;  %v88_v2 = vunpack.c.h.bf16 %v86_v0  ;;  %v83_v22 = vld [vmem:[%s171_s1] ss:$0 sm:$0xff]  ;;  %s120_s17 = smov [#allocation2]  }
   0x3   :  { %v84_v24 = vld [vmem:[%s172_s2] ss:$0 sm:$0xff]  ;;  %s72_s18 = sshll.u32 %s120_s17, 4  ;;  %s73_s18 = int_to_ptr.vmem [resolvable:$true] %s72_s18 }
   0x4   :  { %v20_v3 = vsel %vm19_vm0, %v87_v1, 0.0  ;;  %v23_v4 = vsel %vm19_vm0, %v88_v2, 0.0  ;;  %s96_s19 = scalar_lea.vmem %s73_s18, 256  ;;  %p101_p1 = scmp.lt.s32.totalorder %s73_s18, %s73_s18 }
   0x5   :  { %21 = vadd.xlane.f32.xlu0 %v20_v3  ;;  %p97_p0 = scmp.ne.s32.totalorder %s73_s18, %s96_s19  ;;  %p102_p2 = scmp.lt.s32.totalorder %s96_s19, %s96_s19 }
   0x7   :  { %p103_p3 = por %p102_p2, %p101_p1 }
   0x9   :  { %24 = vadd.xlane.f32.xlu0 %v23_v4  ;;  %p104_p4 = pnand %p103_p3, %p97_p0 }
  0x92   :  { %v22_v5 = vpop.xlane.xlu0 %21 }
  0x93   :  { %v27_v6 = vmul.f32 0.03125, %v22_v5 }
  0x95   :  { %v29_v7 = vsub.f32 %v87_v1, %v27_v6 }
  0x96   :  { %v25_v8 = vpop.xlane.xlu0 %24 }
  0x97   :  { %v28_v9 = vmul.f32 0.03125, %v25_v8  ;;  %v31_v10 = vmul.f32 %v29_v7, %v29_v7 }
  0x99   :  { %v30_v11 = vsub.f32 %v88_v2, %v28_v9  ;;  %v33_v12 = vsel %vm19_vm0, %v31_v10, 0.0 }
  0x9a   :  { %34 = vadd.xlane.f32.xlu1 %v33_v12 }
  0x9b   :  { %v32_v13 = vmul.f32 %v30_v11, %v30_v11 }
  0x9d   :  { %v36_v14 = vsel %vm19_vm0, %v32_v13, 0.0 }
  0x9e   :  { %37 = vadd.xlane.f32.xlu1 %v36_v14 }
 0x127   :  { %v35_v15 = vpop.xlane.xlu1 %34 }
 0x128   :  { %v39_v16 = vmul.f32 0.03125, %v35_v15 }
 0x12a   :  { %v41_v17 = vadd.f32 1e-05, %v39_v16 }
 0x12b   :  { %v38_v18 = vpop.xlane.xlu1 %37 }
 0x12c   :  { %92 = vrsqrt.f32 %v41_v17  ;;  %v40_v19 = vmul.f32 0.03125, %v38_v18 }
 0x12e   :  { %v42_v20 = vadd.f32 1e-05, %v40_v19 }
 0x130   :  { %94 = vrsqrt.f32 %v42_v20 }
 0x136   :  { %v93_v21 = vpop.eup %92 }
 0x137   :  { %v45_v23 = vmul.f32 %v93_v21, %v29_v7 }
 0x139   :  { %v54_v25 = vmul.f32 %v83_v22, %v45_v23 }
 0x13a   :  { %v95_v26 = vpop.eup %94 }
 0x13b   :  { %v46_v27 = vmul.f32 %v95_v26, %v30_v11  ;;  %v63_v28 = vadd.f32 %v84_v24, %v54_v25 }
 0x13d   :  { %v55_v29 = vmul.f32 %v83_v22, %v46_v27  ;;  %65 = vst.msk [vmem:[#allocation2] sm:$0xff] %vm19_vm0, %v63_v28 }
 0x13f   :  { %v64_v30 = vadd.f32 %v84_v24, %v55_v29 }
 0x141   :  { %66 = vst.msk [vmem:[#allocation2 + $0x8] sm:$0xff] %vm19_vm0, %v64_v30 }
 0x142   :  { %107 = shalt.err (!%p104_p4)
}
 0x143   :  { %s108_s20 = scalar_lea.hbm %s173_s3, 256 }
 0x144   :  { %p109_p5 = scmp.ne.s32.totalorder %s173_s3, %s108_s20  ;;  %p112_p6 = scmp.lt.u32.totalorder %s108_s20, %s173_s3 }
 0x146   :  { %p114_p7 = pnand %p112_p6, %p109_p5 }
 0x148   :  { %117 = shalt.err (!%p114_p7)
}
 0x149   :  { %s121_s25 = smov 128   ;;  %s122_s26 = smov 8  }
 0x14a   :  { %78 = dma.vmem_to_hbm [thread:$0]  %s73_s18, 256, %s173_s3, [#allocation3], %s121_s25, %s121_s25, %s122_s26  }
 0x14b   :  { %118 = dma.done.wait [#allocation3], 256  }
 0x14c   :  { %119 = vsyncadd [#allocation3], 4294967040 }
 0x14d   :  { %82 = vsyncpa [#allocation3], 1 }

// kernel: encode_with_transformer.9
= control target key start
LH: loop header
LB: loop body
LE: loop exit
PB: predicated region body
PF: predicated region fallthrough
CT: control target
= control target key end

     0   :  { %vm35_vm0 = vcmask 261120   ;;  %v398_v16 = vmov 0.0   ;;  %vm399_vm1 = vmmov 0   ;;  %vm304_vm2 = vcmask 257024   ;;  %s511_s0 = inlined_call_operand.vmem [shape: bf16[16,32], index: 0, kind: input, shape index: {}]   ;;  %s512_s3 = inlined_call_operand.vmem [shape: bf16[32,128], index: 3, kind: input, shape index: {}]   ;;  %s513_s5 = inlined_call_operand.vmem [shape: bf16[128,32], index: 5, kind: input, shape index: {}]   ;;  %s514_s1 = inlined_call_operand.vmem [shape: f32[1,32], index: 1, kind: input, shape index: {}]   ;;  %s515_s2 = inlined_call_operand.vmem [shape: f32[1,32], index: 2, kind: input, shape index: {}]   ;;  %s516_s4 = inlined_call_operand.vmem [shape: f32[1,128], index: 4, kind: input, shape index: {}]   ;;  %s517_s6 = inlined_call_operand.vmem [shape: f32[1,32], index: 6, kind: input, shape index: {}]   ;;  %s518_s7 = inlined_call_operand.vmem [shape: bf16[16,32], index: 7, kind: output, shape index: {}]  }
   0x1   :  { %v331_v0 = vld [vmem:[%s511_s0] sm:$0xff]   ;;  %350 = vmatprep.subr.bf16.mxu0 %v398_v16  ;;  %83 = vst.msk [vmem:[#allocation3] sm:$0xff] %vm35_vm0, %v398_v16  ;;  %84 = vst.msk [vmem:[#allocation3 + $0x8] sm:$0xff] %vm35_vm0, %v398_v16  ;;  %358 = vmatprep.subr.bf16.mxu1 %v398_v16  ;;  %v381_v17 = vld [vmem:[%s512_s3 + $0x8] sm:$0xff]  }
   0x2   :  { %v443_v1 = vunpack.c.l.bf16 %v331_v0  ;;  %v445_v2 = vunpack.c.h.bf16 %v331_v0  ;;  %v380_v15 = vld [vmem:[%s512_s3] sm:$0xff]   ;;  %354 = vmatprep.mubr.msk.bf16.mxu0 %vm399_vm1, %v398_v16  ;;  %374 = vmatprep.mubr.msk.bf16.mxu1 %vm399_vm1, %v398_v16  ;;  %v383_v19 = vld [vmem:[%s513_s5 + $0x8] sm:$0xff]   ;;  %v384_v38 = vld [vmem:[%s513_s5 + $0x10] sm:$0xff]  }
   0x3   :  { %351 = vmatpush3.bf16.msra.mxu0 %v380_v15  ;;  %v382_v18 = vld [vmem:[%s513_s5] sm:$0xff]   ;;  %v385_v39 = vld [vmem:[%s513_s5 + $0x18] sm:$0xff]   ;;  %v387_v41 = vld [vmem:[%s513_s5 + $0x28] sm:$0xff]  }
   0x4   :  { %v36_v3 = vsel %vm35_vm0, %v443_v1, 0.0  ;;  %v39_v4 = vsel %vm35_vm0, %v445_v2, 0.0  ;;  %352 = vmatprep.subr.bf16.mxu0 %v398_v16  ;;  %359 = vmatpush3.bf16.msra.mxu1 %v382_v18  ;;  %v311_v28 = vld [vmem:[%s514_s1] ss:$0 sm:$0xff]  ;;  %v388_v42 = vld [vmem:[%s513_s5 + $0x30] sm:$0xff]   ;;  %v389_v43 = vld [vmem:[%s513_s5 + $0x38] sm:$0xff]  }
   0x5   :  { %37 = vadd.xlane.f32.xlu0 %v36_v3  ;;  %360 = vmatprep.subr.bf16.mxu1 %v398_v16  ;;  %v312_v32 = vld [vmem:[%s515_s2] ss:$0 sm:$0xff] }
   0x6   :  { %v386_v40 = vld [vmem:[%s513_s5 + $0x20] sm:$0xff]  }
   0x7   :  { %353 = vmatpush3.bf16.msra.mxu0 %v381_v17  ;;  %v313_v44 = vld [vmem:[%s516_s4] ss:$0 sm:$0xff] }
   0x8   :  { %361 = vmatpush3.bf16.msra.mxu1 %v383_v19  ;;  %v164_v62 = vld [vmem:[#allocation3] sm:$0xff]  ;;  %v165_v0 = vld [vmem:[#allocation3 + $0x8] sm:$0xff] }
   0x9   :  { %40 = vadd.xlane.f32.xlu0 %v39_v4  ;;  %362 = vmatprep.subr.bf16.mxu1 %v398_v16 }
   0xc   :  { %363 = vmatpush3.bf16.msra.mxu1 %v384_v38 }
   0xd   :  { %364 = vmatprep.subr.bf16.mxu1 %v398_v16 }
  0x10   :  { %365 = vmatpush3.bf16.msra.mxu1 %v385_v39 }
  0x11   :  { %366 = vmatprep.subr.bf16.mxu1 %v398_v16 }
  0x14   :  { %367 = vmatpush3.bf16.msra.mxu1 %v386_v40 }
  0x15   :  { %368 = vmatprep.subr.bf16.mxu1 %v398_v16 }
  0x18   :  { %369 = vmatpush3.bf16.msra.mxu1 %v387_v41 }
  0x19   :  { %370 = vmatprep.subr.bf16.mxu1 %v398_v16 }
  0x1c   :  { %371 = vmatpush3.bf16.msra.mxu1 %v388_v42 }
  0x1d   :  { %372 = vmatprep.subr.bf16.mxu1 %v398_v16 }
  0x20   :  { %373 = vmatpush3.bf16.msra.mxu1 %v389_v43 }
  0x92   :  { %v38_v5 = vpop.xlane.xlu0 %37 }
  0x93   :  { %v43_v6 = vmul.f32 0.03125, %v38_v5 }
  0x95   :  { %v45_v7 = vsub.f32 %v443_v1, %v43_v6 }
  0x96   :  { %v41_v8 = vpop.xlane.xlu0 %40 }
  0x97   :  { %v44_v9 = vmul.f32 0.03125, %v41_v8  ;;  %v47_v10 = vmul.f32 %v45_v7, %v45_v7 }
  0x99   :  { %v46_v11 = vsub.f32 %v445_v2, %v44_v9  ;;  %v49_v12 = vsel %vm35_vm0, %v47_v10, 0.0  ;;  %v325_v9 = vld [vmem:[%s517_s6] ss:$0 sm:$0xff] }
  0x9a   :  { %50 = vadd.xlane.f32.xlu1 %v49_v12 }
  0x9b   :  { %v48_v13 = vmul.f32 %v46_v11, %v46_v11 }
  0x9d   :  { %v52_v14 = vsel %vm35_vm0, %v48_v13, 0.0 }
  0x9e   :  { %53 = vadd.xlane.f32.xlu1 %v52_v14 }
 0x127   :  { %v51_v20 = vpop.xlane.xlu1 %50 }
 0x128   :  { %v55_v21 = vmul.f32 0.03125, %v51_v20 }
 0x12a   :  { %v57_v22 = vadd.f32 1e-05, %v55_v21 }
 0x12b   :  { %v54_v23 = vpop.xlane.xlu1 %53 }
 0x12c   :  { %390 = vrsqrt.f32 %v57_v22  ;;  %v56_v24 = vmul.f32 0.03125, %v54_v23 }
 0x12e   :  { %v58_v25 = vadd.f32 1e-05, %v56_v24 }
 0x130   :  { %392 = vrsqrt.f32 %v58_v25 }
 0x136   :  { %v391_v26 = vpop.eup %390 }
 0x137   :  { %v61_v27 = vmul.f32 %v391_v26, %v45_v7 }
 0x139   :  { %v70_v30 = vmul.f32 %v311_v28, %v61_v27 }
 0x13a   :  { %v393_v29 = vpop.eup %392 }
 0x13b   :  { %v62_v31 = vmul.f32 %v393_v29, %v46_v11  ;;  %v79_v34 = vadd.f32 %v312_v32, %v70_v30 }
 0x13d   :  { %v71_v33 = vmul.f32 %v311_v28, %v62_v31 }
 0x13f   :  { %v80_v35 = vadd.f32 %v312_v32, %v71_v33 }
 0x141   :  { %v81_v36 = vpack.c.bf16 %v80_v35, %v79_v34 }
 0x143   :  { %82 = vst.msk [vmem:[#allocation2] sm:$0xff] %vm35_vm0, %v81_v36 }
 0x14a   :  { %v85_v37 = vld [vmem:[#allocation2] sm:$0xff] }
 0x14b   :  { %355 = vmatmul.mubr.msk.bf16.vlgmr.msra.gmra.mrb[0].mxu0 %vm35_vm0, %v85_v37 }
 0x21e   :  { %v147_v45 = vpop.f32.mrb[0].mxu0 }
 0x21f   :  { %v148_v46 = vadd.f32 %v313_v44, %v147_v45  ;;  %v356_v47 = vpop.f32.mrb[1].mxu0 }
 0x220   :  { %v150_v48 = vpop.f32.mrb[2].mxu0 }
 0x221   :  { %v156_v49 = vmul.f32 0.70710677, %v148_v46  ;;  %v151_v50 = vadd.f32 %v313_v44, %v150_v48  ;;  %v357_v51 = vpop.f32.mrb[3].mxu0  ;;  %v154_v56 = vmul.f32 0.5, %v148_v46 }
 0x223   :  { %394 = verf.f32 %v156_v49  ;;  %v157_v52 = vmul.f32 0.70710677, %v151_v50  ;;  %v155_v57 = vmul.f32 0.5, %v151_v50 }
 0x225   :  { %396 = verf.f32 %v157_v52 }
 0x22d   :  { %v395_v53 = vpop.eup %394 }
 0x22e   :  { %v160_v54 = vadd.f32 1.0, %v395_v53 }
 0x22f   :  { %v397_v55 = vpop.eup %396 }
 0x230   :  { %v161_v58 = vadd.f32 1.0, %v397_v55  ;;  %v162_v59 = vmul.f32 %v160_v54, %v154_v56 }
 0x232   :  { %v163_v60 = vmul.f32 %v161_v58, %v155_v57 }
 0x234   :  { %v166_v61 = vpack.c.bf16 %v163_v60, %v162_v59 }
 0x236   :  { %375 = vmatmul.mubr.bf16.vlgmr.msra.gmra.mrb[0].mxu1 %v166_v61 }
 0x309   :  { %v265_v63 = vpop.f32.mrb[0].mxu1 }
 0x30a   :  { %v272_v3 = vadd.f32 %v265_v63, %v164_v62  ;;  %v376_v4 = vpop.f32.mrb[1].mxu1 }
 0x30b   :  { %v268_v5 = vpop.f32.mrb[2].mxu1 }
 0x30c   :  { %274 = vst.msk [vmem:[#allocation3] sm:$0xff] %vm35_vm0, %v272_v3  ;;  %v273_v6 = vadd.f32 %v268_v5, %v165_v0  ;;  %v377_v7 = vpop.f32.mrb[3].mxu1 }
 0x30e   :  { %275 = vst.msk [vmem:[#allocation3 + $0x8] sm:$0xff] %vm35_vm0, %v273_v6 }
 0x313   :  { %v283_v8 = vld [vmem:[#allocation3] sm:$0xff] }
 0x314   :  { %v285_v10 = vadd.f32 %v443_v1, %v283_v8 }
 0x315   :  { %v284_v11 = vld [vmem:[#allocation3 + $0x8] sm:$0xff] }
 0x316   :  { %v294_v12 = vadd.f32 %v325_v9, %v285_v10  ;;  %v286_v13 = vadd.f32 %v445_v2, %v284_v11 }
 0x318   :  { %v328_v14 = vpack.c.bf16 %v294_v12, %v294_v12  ;;  %v295_v15 = vadd.f32 %v325_v9, %v286_v13 }
 0x31a   :  { %305 = vst.msk [vmem:[%s518_s7] sm:$0xf] %vm304_vm2, %v328_v14  ;;  %v329_v16 = vpack.c.bf16 %v295_v15, %v295_v15 }
 0x31c   :  { %306 = vst.msk [vmem:[%s518_s7 + $0x4] sm:$0xf] %vm304_vm2, %v329_v16 }

// kernel: encode_with_transformer.8
= control target key start
LH: loop header
LB: loop body
LE: loop exit
PB: predicated region body
PF: predicated region fallthrough
CT: control target
= control target key end

     0   :  { %s1145_s15 = smov 0   ;;  %s1287_s0 = inlined_call_operand.vmem [shape: bf16[2,8,96], index: 0, kind: input, shape index: {}]   ;;  %s1288_s1 = inlined_call_operand.vmem [shape: bf16[32,32], index: 1, kind: input, shape index: {}]   ;;  %s1289_s2 = inlined_call_operand.vmem [shape: f32[1,32], index: 2, kind: input, shape index: {}]   ;;  %s1290_s3 = inlined_call_operand.vmem [shape: bf16[2,8,32], index: 3, kind: input, shape index: {}]   ;;  %s1291_s4 = inlined_call_operand.vmem [shape: bf16[2,8,32], index: 4, kind: output, shape index: {}]  }
   0x1 LB: > { %s941_s16 = sadd.s32 4294967295, %s1105_s15   ;;  %p945_p0 = scmp.ge.s32.totalorder %s1105_s15, 1  ;;  %s1105_s15 = sphi %s1145_s15, %s14_s15  }
   0x2   : > { %p170_p1 = scmp.lt.s32.totalorder %s1105_s15, 3 }
   0x4   : > { %p171_p2 = pnand %p945_p0, %p170_p1 }
   0x5   : > { %p198_p3 = scmp.lt.s32.totalorder (!%p171_p2), %s941_s16, 1  ;;  %v1107_v0 = vmov (!%p171_p2), 0.0   ;;  %vm1108_vm0 = vmmov (!%p171_p2), 0   ;;  %s1109_s21 = smov (!%p171_p2), 96   ;;  %vm222_vm1 = vcmask (!%p171_p2), 64512   ;;  %v212_v5 = vlaneseq (!%p171_p2) }
   0x6   : > { %174 = sbr.rel (%p171_p2) target bundleno = 2939 (0xb7b), region = 36  ;;  %989 = vmatprep.subr.bf16.mxu0 (!%p171_p2), %v1107_v0  ;;  %991 = vmatprep.mubr.msk.bf16.mxu0 (!%p171_p2), %vm1108_vm0, %v1107_v0  ;;  %s1110_s22 = smov (!%p171_p2), 64   ;;  %vm288_vm3 = vcmask (!%p171_p2), 1043456   ;;  %v447_v45 = vld [vmem:[%s1288_s1 + $0x4] sm:$0xf] (!%p171_p2)  ;;  %vm874_vm4 = vcmask (!%p171_p2), 257024  }
   0x7   : > { %995 = vmatprep.subr.bf16.mxu1 (!%p171_p2), %v1107_v0  ;;  %997 = vmatprep.mubr.msk.bf16.mxu1 (!%p171_p2), %vm1108_vm0, %v1107_v0  ;;  %v1174_v6 = vshrl.u32 (!%p171_p2), %v212_v5, 7  ;;  %v1176_v7 = vand.u32 (!%p171_p2), 127, %v212_v5  ;;  %s1111_s23 = smov (!%p171_p2), 88   ;;  %s1112_s24 = smov (!%p171_p2), 120   ;;  %v452_v46 = vsel (!%p171_p2), %vm288_vm3, %v447_v45, 0 }
   0x8   : > { %s1113_s25 = smov (!%p171_p2), 56   ;;  %s1114_s28 = smov (!%p171_p2), 80   ;;  %v333_v51 = vld [vmem:[%s1288_s1] sm:$0xf] (!%p171_p2) }
   0x9   : > { %vm216_vm2 = vcmp.le.s32.totalorder (!%p171_p2), %v1176_v7, %v1174_v6  ;;  %s1115_s29 = smov (!%p171_p2), 112   ;;  %v498_v54 = vsel (!%p171_p2), %vm288_vm3, %v333_v51, 0  ;;  %s1116_s6 = smov (!%p171_p2), 48  }
   0xa   : > { %s1117_s7 = smov (!%p171_p2), 72   ;;  %s1118_s8 = smov (!%p171_p2), 104  }
   0xb   : > { %s1119_s11 = smov (!%p171_p2), 40  }
   0xd   : > { %s1293_s16 = smov (!%p198_p3, %s941_s16), 1 }
   0xe   : > { %s1159_s17 = sshll.u32 %s1293_s16, 2 }
   0xf   : > { %s201_s20 = scalar_lea.vmem %s1287_s0, %s1159_s17  ;;  %s205_s18 = scalar_lea.vmem %s1290_s3, %s1159_s17 }
  0x10   : > { %v211_v1 = vld [vmem:[%s201_s20] sm:$0xf] }
  0x11   : > { %v1165_v2 = vcombine.low %v211_v1, %v211_v1 }
  0x13   : > { %220 = vrot.lane.b32.xlu0 %v1165_v2, %s1109_s21  ;;  %283 = vrot.lane.b32.xlu1 %v1165_v2, %s1110_s22 }
  0x85   : > { %v221_v3 = vpop.permute.xlu0 %220  ;;  %v284_v15 = vpop.permute.xlu1 %283 }
  0x86   : > { %v227_v4 = vsel %vm222_vm1, %v221_v3, 0  ;;  %v290_v16 = vsel %vm288_vm3, %v284_v15, 0 }
  0x87   : > { %990 = vmatpush3.bf16.xpose.msra.mxu0 %v227_v4  ;;  %996 = vmatpush3.bf16.msra.mxu1 %v290_v16 }
  0x88   : > { %1007 = vmatprep.subr.bf16.mxu0 %v1107_v0  ;;  %1001 = vmatprep.subr.bf16.mxu1 %v1107_v0 }
  0x8e   : > { %992 = vmatmul.mubr.msk.bf16.vlgmr.msra.gmra.mrb[0].mxu0 %vm222_vm1, %v211_v1 }
  0x8f   : > { %1009 = vmatprep.mubr.msk.bf16.mxu0 %vm1108_vm0, %v1107_v0 }
 0x161   : > { %v263_v8 = vpop.f32.mrb[0].mxu0 }
 0x162   : > { %v269_v9 = vmul.f32 0.35355338, %v263_v8  ;;  %v993_v10 = vpop.f32.mrb[1].mxu0 }
 0x163   : > { %v266_v11 = vpop.f32.mrb[2].mxu0 }
 0x164   : > { %v994_v12 = vpop.f32.mrb[3].mxu0  ;;  %v270_v13 = vsel %vm216_vm2, %v269_v9, -1e+30 }
 0x165   : > { %v271_v14 = vsel %vm222_vm1, %v270_v13, -inf }
 0x166   : > { %272 = vmax.xlane.f32.xlu0 %v271_v14 }
 0x1f3   : > { %v273_v17 = vpop.xlane.xlu0 %272 }
 0x1f4   : > { %v274_v18 = vsub.f32 %v270_v13, %v273_v17 }
 0x1f6   : > { %v275_v19 = vmul.f32 1.442695, %v274_v18 }
 0x1f8   : > { %1083 = vpow2.f32 %v275_v19 }
 0x202   : > { %v1084_v20 = vpop.eup %1083 }
 0x203   : > { %v277_v21 = vsel %vm222_vm1, %v1084_v20, 0.0 }
 0x204   : > { %278 = vadd.xlane.f32.xlu1 %v277_v21 }
 0x215   : > { %336 = vrot.lane.b32.xlu1 %v1165_v2, %s1111_s23  ;;  %s209_s23 = scalar_lea.vmem %s1291_s4, %s1159_s17 }
 0x219   : > { %334 = vrot.lane.b32.xlu1 %v1165_v2, %s1112_s24 }
 0x291   : > { %v279_v22 = vpop.xlane.xlu1 %278 }
 0x292   : > { %1085 = vrcp.f32 %v279_v22 }
 0x295   : > { %v337_v24 = vpop.permute.xlu1 %336 }
 0x296   : > { %v342_v26 = vsel %vm222_vm1, %v337_v24, 0 }
 0x299   : > { %v335_v28 = vpop.permute.xlu1 %334 }
 0x29c   : > { %v1086_v23 = vpop.eup %1085 }
 0x29d   : > { %v281_v25 = vmul.f32 %v1086_v23, %v1084_v20 }
 0x29f   : > { %v282_v27 = vpack.c.bf16 %v281_v25, %v281_v25 }
 0x2a1   : > { %998 = vmatmul.mubr.msk.bf16.vlgmr.msra.gmra.mrb[0].mxu1 %vm222_vm1, %v282_v27 }
 0x2a2   : > { %1002 = vmatpush3.bf16.xpose.msra.mxu1 %v342_v26  ;;  %1003 = vmatprep.mubr.msk.bf16.mxu1 %vm1108_vm0, %v1107_v0 }
 0x2a3   : > { %1013 = vmatprep.subr.bf16.mxu1 %v1107_v0 }
 0x2a9   : > { %1004 = vmatmul.mubr.msk.bf16.vlgmr.msra.gmra.mrb[4].mxu1 %vm222_vm1, %v335_v28 }
 0x2aa   : > { %1015 = vmatprep.mubr.msk.bf16.mxu1 %vm1108_vm0, %v1107_v0  ;;  %1014 = vmatpush3.bf16.msra.mxu1 %v452_v46 }
 0x2ab   : > { %1025 = vmatprep.subr.bf16.mxu1 %v1107_v0 }
 0x374   : > { %v326_v29 = vpop.f32.mrb[0].mxu1 }
 0x375   : > { %v999_v30 = vpop.f32.mrb[1].mxu1  ;;  %v332_v55 = vpack.c.bf16 %v326_v29, %v326_v29 }
 0x376   : > { %v329_v31 = vpop.f32.mrb[2].mxu1 }
 0x377   : > { %v1000_v32 = vpop.f32.mrb[3].mxu1 }
 0x37c   : > { %v378_v33 = vpop.f32.mrb[4].mxu1 }
 0x37d   : > { %v384_v34 = vmul.f32 0.35355338, %v378_v33  ;;  %v1005_v35 = vpop.f32.mrb[5].mxu1 }
 0x37e   : > { %v381_v36 = vpop.f32.mrb[6].mxu1 }
 0x37f   : > { %v1006_v37 = vpop.f32.mrb[7].mxu1  ;;  %v385_v38 = vsel %vm216_vm2, %v384_v34, -1e+30  ;;  %v653_v34 = vld [vmem:[%s1288_s1 + $0x8] sm:$0xf] }
 0x380   : > { %v386_v39 = vsel %vm222_vm1, %v385_v38, -inf  ;;  %v658_v35 = vsel %vm288_vm3, %v653_v34, 0 }
 0x381   : > { %387 = vmax.xlane.f32.xlu1 %v386_v39 }
 0x40e   : > { %v388_v40 = vpop.xlane.xlu1 %387 }
 0x40f   : > { %v389_v41 = vsub.f32 %v385_v38, %v388_v40 }
 0x411   : > { %v390_v42 = vmul.f32 1.442695, %v389_v41 }
 0x413   : > { %1087 = vpow2.f32 %v390_v42 }
 0x41d   : > { %v1088_v43 = vpop.eup %1087 }
 0x41e   : > { %v392_v44 = vsel %vm222_vm1, %v1088_v43, 0.0 }
 0x41f   : > { %393 = vadd.xlane.f32.xlu0 %v392_v44 }
 0x435   : > { %398 = vrot.lane.b32.xlu0 %v1165_v2, %s1113_s25 }
 0x439   : > { %542 = vrot.lane.b32.xlu0 %v1165_v2, %s1114_s28 }
 0x43d   : > { %540 = vrot.lane.b32.xlu0 %v1165_v2, %s1115_s29 }
 0x4ac   : > { %v394_v47 = vpop.xlane.xlu0 %393 }
 0x4ad   : > { %1089 = vrcp.f32 %v394_v47 }
 0x4b0   : > { %v399_v48 = vpop.permute.xlu0 %398 }
 0x4b1   : > { %v404_v49 = vsel %vm288_vm3, %v399_v48, 0 }
 0x4b2   : > { %1008 = vmatpush3.bf16.msra.mxu0 %v404_v49 }
 0x4b3   : > { %1019 = vmatprep.subr.bf16.mxu0 %v1107_v0 }
 0x4b4   : > { %v543_v56 = vpop.permute.xlu0 %542 }
 0x4b5   : > { %v548_v59 = vsel %vm222_vm1, %v543_v56, 0 }
 0x4b7   : > { %v1090_v50 = vpop.eup %1089 }
 0x4b8   : > { %v396_v52 = vmul.f32 %v1090_v50, %v1088_v43  ;;  %v541_v1 = vpop.permute.xlu0 %540 }
 0x4ba   : > { %v397_v53 = vpack.c.bf16 %v396_v52, %v396_v52 }
 0x4bc   : > { %1010 = vmatmul.mubr.msk.bf16.vlgmr.msra.gmra.mrb[4].mxu0 %vm222_vm1, %v397_v53 }
 0x4bd   : > { %1020 = vmatpush3.bf16.msra.mxu0 %v498_v54  ;;  %1021 = vmatprep.mubr.msk.bf16.mxu0 %vm1108_vm0, %v1107_v0 }
 0x4be   : > { %1031 = vmatprep.subr.bf16.mxu0 %v1107_v0 }
 0x4c4   : > { %1022 = vmatmul.mubr.msk.bf16.vlgmr.msra.gmra.mrb[8].mxu0 %vm222_vm1, %v332_v55 }
 0x4c5   : > { %1033 = vmatprep.mubr.msk.bf16.mxu0 %vm1108_vm0, %v1107_v0 }
 0x58f   : > { %v440_v57 = vpop.f32.mrb[4].mxu0 }
 0x590   : > { %v446_v58 = vpack.c.bf16 %v440_v57, %v440_v57  ;;  %v1011_v60 = vpop.f32.mrb[5].mxu0 }
 0x591   : > { %v443_v61 = vpop.f32.mrb[6].mxu0 }
 0x592   : > { %v1012_v62 = vpop.f32.mrb[7].mxu0  ;;  %1016 = vmatmul.mubr.msk.bf16.vlgmr.msra.gmra.mrb[8].mxu1 %vm222_vm1, %v446_v58 }
 0x593   : > { %1026 = vmatpush3.bf16.xpose.msra.mxu1 %v548_v59  ;;  %1027 = vmatprep.mubr.msk.bf16.mxu1 %vm1108_vm0, %v1107_v0 }
 0x594   : > { %1037 = vmatprep.subr.bf16.mxu1 %v1107_v0 }
 0x597   : > { %v534_v63 = vpop.f32.mrb[8].mxu0 }
 0x598   : > { %v1023_v3 = vpop.f32.mrb[9].mxu0 }
 0x599   : > { %v537_v4 = vpop.f32.mrb[10].mxu0 }
 0x59a   : > { %v1024_v5 = vpop.f32.mrb[11].mxu0  ;;  %1028 = vmatmul.mubr.msk.bf16.vlgmr.msra.gmra.mrb[12].mxu1 %vm222_vm1, %v541_v1 }
 0x59b   : > { %1039 = vmatprep.mubr.msk.bf16.mxu1 %vm1108_vm0, %v1107_v0  ;;  %1038 = vmatpush3.bf16.msra.mxu1 %v658_v35  ;;  %v870_v5 = vld [vmem:[%s205_s18] sm:$0xf] }
 0x59c   : > { %1049 = vmatprep.subr.bf16.mxu1 %v1107_v0 }
 0x665   : > { %v488_v8 = vpop.f32.mrb[8].mxu1 }
 0x666   : > { %v1231_v9 = vadd.f32 %v534_v63, %v488_v8  ;;  %v1017_v10 = vpop.f32.mrb[9].mxu1 }
 0x667   : > { %v491_v11 = vpop.f32.mrb[10].mxu1 }
 0x668   : > { %v1018_v12 = vpop.f32.mrb[11].mxu1  ;;  %v871_v11 = vunpack.c.l.bf16 %v870_v5 }
 0x66d   : > { %v584_v13 = vpop.f32.mrb[12].mxu1 }
 0x66e   : > { %v590_v14 = vmul.f32 0.35355338, %v584_v13  ;;  %v1029_v15 = vpop.f32.mrb[13].mxu1 }
 0x66f   : > { %v587_v16 = vpop.f32.mrb[14].mxu1 }
 0x670   : > { %v1030_v17 = vpop.f32.mrb[15].mxu1  ;;  %v591_v18 = vsel %vm216_vm2, %v590_v14, -1e+30 }
 0x671   : > { %v592_v19 = vsel %vm222_vm1, %v591_v18, -inf }
 0x672   : > { %593 = vmax.xlane.f32.xlu1 %v592_v19 }
 0x683   : > { %604 = vrot.lane.b32.xlu1 %v1165_v2, %s1116_s6 }
 0x687   : > { %703 = vrot.lane.b32.xlu1 %v1165_v2, %s1117_s7 }
 0x68b   : > { %701 = vrot.lane.b32.xlu1 %v1165_v2, %s1118_s8 }
 0x6ff   : > { %v594_v20 = vpop.xlane.xlu1 %593 }
 0x700   : > { %v595_v21 = vsub.f32 %v591_v18, %v594_v20 }
 0x702   : > { %v596_v22 = vmul.f32 1.442695, %v595_v21 }
 0x703   : > { %v605_v25 = vpop.permute.xlu1 %604 }
 0x704   : > { %1091 = vpow2.f32 %v596_v22  ;;  %v610_v26 = vsel %vm288_vm3, %v605_v25, 0 }
 0x705   : > { %1032 = vmatpush3.bf16.msra.mxu0 %v610_v26 }
 0x706   : > { %1043 = vmatprep.subr.bf16.mxu0 %v1107_v0 }
 0x707   : > { %v704_v29 = vpop.permute.xlu1 %703 }
 0x708   : > { %v709_v31 = vsel %vm222_vm1, %v704_v29, 0 }
 0x70b   : > { %v702_v33 = vpop.permute.xlu1 %701 }
 0x70e   : > { %v1092_v23 = vpop.eup %1091 }
 0x70f   : > { %v598_v24 = vsel %vm222_vm1, %v1092_v23, 0.0 }
 0x710   : > { %599 = vadd.xlane.f32.xlu0 %v598_v24 }
 0x79d   : > { %v600_v27 = vpop.xlane.xlu0 %599 }
 0x79e   : > { %1093 = vrcp.f32 %v600_v27 }
 0x7a8   : > { %v1094_v28 = vpop.eup %1093 }
 0x7a9   : > { %v602_v30 = vmul.f32 %v1094_v28, %v1092_v23 }
 0x7ab   : > { %v603_v32 = vpack.c.bf16 %v602_v30, %v602_v30 }
 0x7ad   : > { %1034 = vmatmul.mubr.msk.bf16.vlgmr.msra.gmra.mrb[12].mxu0 %vm222_vm1, %v603_v32 }
 0x7ae   : > { %1044 = vmatpush3.bf16.xpose.msra.mxu0 %v709_v31  ;;  %1045 = vmatprep.mubr.msk.bf16.mxu0 %vm1108_vm0, %v1107_v0 }
 0x7af   : > { %1055 = vmatprep.subr.bf16.mxu0 %v1107_v0 }
 0x7b5   : > { %1046 = vmatmul.mubr.msk.bf16.vlgmr.msra.gmra.mrb[16].mxu0 %vm222_vm1, %v702_v33 }
 0x7b6   : > { %1057 = vmatprep.mubr.msk.bf16.mxu0 %vm1108_vm0, %v1107_v0 }
 0x880   : > { %v646_v36 = vpop.f32.mrb[12].mxu0 }
 0x881   : > { %v652_v37 = vpack.c.bf16 %v646_v36, %v646_v36  ;;  %v1035_v38 = vpop.f32.mrb[13].mxu0 }
 0x882   : > { %v649_v39 = vpop.f32.mrb[14].mxu0 }
 0x883   : > { %v1036_v40 = vpop.f32.mrb[15].mxu0  ;;  %1040 = vmatmul.mubr.msk.bf16.vlgmr.msra.gmra.mrb[16].mxu1 %vm222_vm1, %v652_v37 }
 0x884   : > { %1051 = vmatprep.mubr.msk.bf16.mxu1 %vm1108_vm0, %v1107_v0  ;;  %v814_v0 = vld [vmem:[%s1288_s1 + $0xc] sm:$0xf] }
 0x885   : > { %v819_v6 = vsel %vm288_vm3, %v814_v0, 0 }
 0x886   : > { %1056 = vmatpush3.bf16.msra.mxu0 %v819_v6 }
 0x888   : > { %v745_v41 = vpop.f32.mrb[16].mxu0 }
 0x889   : > { %v751_v42 = vmul.f32 0.35355338, %v745_v41  ;;  %v1047_v43 = vpop.f32.mrb[17].mxu0 }
 0x88a   : > { %v748_v44 = vpop.f32.mrb[18].mxu0 }
 0x88b   : > { %v1048_v45 = vpop.f32.mrb[19].mxu0  ;;  %v752_v46 = vsel %vm216_vm2, %v751_v42, -1e+30 }
 0x88c   : > { %v753_v47 = vsel %vm222_vm1, %v752_v46, -inf }
 0x88d   : > { %754 = vmax.xlane.f32.xlu1 %v753_v47 }
 0x91a   : > { %v755_v48 = vpop.xlane.xlu1 %754 }
 0x91b   : > { %v756_v49 = vsub.f32 %v752_v46, %v755_v48 }
 0x91d   : > { %v757_v50 = vmul.f32 1.442695, %v756_v49 }
 0x91f   : > { %1095 = vpow2.f32 %v757_v50 }
 0x929   : > { %v1096_v51 = vpop.eup %1095 }
 0x92a   : > { %v759_v52 = vsel %vm222_vm1, %v1096_v51, 0.0 }
 0x92b   : > { %760 = vadd.xlane.f32.xlu0 %v759_v52 }
 0x941   : > { %765 = vrot.lane.b32.xlu0 %v1165_v2, %s1119_s11 }
 0x956   : > { %v694_v7 = vpop.f32.mrb[16].mxu1 }
 0x957   : > { %v700_v53 = vadd.f32 %v694_v7, %v1231_v9  ;;  %v1041_v54 = vpop.f32.mrb[17].mxu1  ;;  %v962_v9 = vld [vmem:[%s1289_s2] ss:$0 sm:$0xff] }
 0x958   : > { %v697_v55 = vpop.f32.mrb[18].mxu1 }
 0x959   : > { %v1042_v56 = vpop.f32.mrb[19].mxu1 }
 0x9b8   : > { %v761_v57 = vpop.xlane.xlu0 %760 }
 0x9b9   : > { %1097 = vrcp.f32 %v761_v57 }
 0x9bc   : > { %v766_v58 = vpop.permute.xlu0 %765 }
 0x9bd   : > { %v771_v59 = vsel %vm288_vm3, %v766_v58, 0 }
 0x9be   : > { %1050 = vmatpush3.bf16.msra.mxu1 %v771_v59 }
 0x9c3   : > { %v1098_v2 = vpop.eup %1097 }
 0x9c4   : > { %v763_v60 = vmul.f32 %v1098_v2, %v1096_v51 }
 0x9c6   : > { %v764_v61 = vpack.c.bf16 %v763_v60, %v763_v60 }
 0x9c8   : > { %1052 = vmatmul.mubr.msk.bf16.vlgmr.msra.gmra.mrb[20].mxu1 %vm222_vm1, %v764_v61 }
 0xa9b   : > { %v807_v62 = vpop.f32.mrb[20].mxu1 }
 0xa9c   : > { %v813_v63 = vpack.c.bf16 %v807_v62, %v807_v62  ;;  %v1053_v1 = vpop.f32.mrb[21].mxu1 }
 0xa9d   : > { %v810_v3 = vpop.f32.mrb[22].mxu1 }
 0xa9e   : > { %v1054_v4 = vpop.f32.mrb[23].mxu1  ;;  %1058 = vmatmul.mubr.msk.bf16.vlgmr.msra.gmra.mrb[20].mxu0 %vm222_vm1, %v813_v63 }
 0xb71   : > { %v855_v8 = vpop.f32.mrb[20].mxu0 }
 0xb72   : > { %v861_v10 = vadd.f32 %v855_v8, %v700_v53  ;;  %v1059_v12 = vpop.f32.mrb[21].mxu0 }
 0xb73   : > { %v858_v13 = vpop.f32.mrb[22].mxu0 }
 0xb74   : > { %v869_v14 = vadd.f32 %v962_v9, %v861_v10  ;;  %v1060_v15 = vpop.f32.mrb[23].mxu0 }
 0xb76   : > { %v872_v16 = vadd.f32 %v871_v11, %v869_v14 }
 0xb78   : > { %v873_v17 = vpack.c.bf16 %v872_v16, %v872_v16 }
 0xb7a   : > { %875 = vst.msk [vmem:[%s209_s23] sm:$0xf] %vm874_vm4, %v873_v17 }
 0xb7b PF: > { %s14_s15 = sadd.s32 1, %s1105_s15  }
 0xb7c   : > { %p11_p4 = scmp.ge.s32.totalorder %s14_s15, 4  }
 0xb7e   :  { %13 = sbr.rel (!%p11_p4) target bundleno = 1 (0x1), region = 69 }

</bundles_post_ra>
